<compile_context>
chip_gen: v5e
topology: v5e:2x2
jax: 0.10.0
libtpu: 0.0.40
codegen_flags: <defaults>
</compile_context>

<pallas_src>
import jax
import jax.numpy as jnp
from jax.experimental import pallas as pl
from jax.experimental.pallas import tpu as pltpu
import numpy as np

HIDDEN = 128
INPUT_DIM = 10
NUM_LAYERS = 2
OUTPUT_DIM = 10
SEQ_LEN = 5
SEQ_PAD = 8          # sublane-aligned sequence slab


def _fast_sigmoid(x):
    # exp -> EUP, approximate reciprocal -> EUP vrcp (free bundle slot); avoids a
    # full-precision VPU divide on the serial gate chain.
    return pl.reciprocal(1.0 + jnp.exp(-x), approx=True)


def gru_kernel(x_ref, wih0_ref, whh0_ref, bcomb0_ref, bhhn0_ref,
               wcat1_ref, bcomb1_ref, fcw_ref, fcb_ref, out_ref):
    """Everything VMEM-resident (<1 MiB).

    x_ref    : (SEQ_PAD, 128)  bf16  input slab (zero-padded lanes/rows)
    wih0_ref : (128, 384)      bf16  layer-0 input->gates weights^T (rows >= INPUT_DIM zero)
    whh0_ref : (128, 384)      bf16  layer-0 hidden->gates weights^T
    bcomb0_ref:(1, 384)        f32   layer-0 bih with bhh folded into the r/z slices
    bhhn0_ref: (1, 128)        f32   layer-0 hidden bias for the n gate
    wcat1_ref: (256, 512)      bf16  layer-1 fused [Wih;Whh]^T, cols = [r|z sum, n_in, n_hid]
    bcomb1_ref:(1, 512)        f32   layer-1 biases matching the wcat1 column layout
    fcw_ref  : (128, 128)      bf16  fc weight^T, output dim zero-padded to 128
    fcb_ref  : (1, 128)        f32   fc bias, zero-padded
    out_ref  : (1, 128)        f32   padded output (first OUTPUT_DIM lanes valid)
    """
    H = HIDDEN

    whh0 = whh0_ref[...]
    bhhn0 = bhhn0_ref[...]
    wcat1 = wcat1_ref[...]
    bcomb1 = bcomb1_ref[...]

    # Layer-0 input projection for ALL timesteps in one MXU matmul (off the serial chain).
    gi_all0 = jnp.dot(x_ref[...], wih0_ref[...],
                      preferred_element_type=jnp.float32) + bcomb0_ref[...]    # (SEQ_PAD, 3H)

    def cell_l0(gi, h_prev):
        # gh kept separate from gi because n = tanh(gi_n + r * (gh_n + bhh_n)).
        gh = jnp.dot(h_prev.astype(jnp.bfloat16), whh0,
                     preferred_element_type=jnp.float32)                        # (1, 3H)
        rz = _fast_sigmoid(gi[:, :2 * H] + gh[:, :2 * H])
        r, z = rz[:, :H], rz[:, H:]
        n = jnp.tanh(gi[:, 2 * H:] + r * (gh[:, 2 * H:] + bhhn0))
        return (1.0 - z) * n + z * h_prev

    def cell_l1(x_in, h_prev):
        # One fused 256-deep matmul: [x_t ; h_{t-1}] @ [Wih ; Whh].  Output columns:
        # [0,2H)  : r|z with input+hidden parts summed (sigmoid needs only the sum)
        # [2H,3H) : n from Wih (+ bih_n)
        # [3H,4H) : n from Whh (+ bhh_n)   -> r multiplies only this part.
        lhs = jnp.concatenate([x_in, h_prev], axis=-1).astype(jnp.bfloat16)     # (1, 2H)
        g = jnp.dot(lhs, wcat1, preferred_element_type=jnp.float32) + bcomb1    # (1, 4H)
        rz = _fast_sigmoid(g[:, :2 * H])
        r, z = rz[:, :H], rz[:, H:2 * H]
        n = jnp.tanh(g[:, 2 * H:3 * H] + r * g[:, 3 * H:])
        return (1.0 - z) * n + z * h_prev

    # Wavefront over the two layers: super-step s runs L0(t=s) and L1(t=s-1), which are
    # mutually independent within a super-step -> two chains in flight.
    h1 = jnp.zeros((1, H), jnp.float32)
    h2 = jnp.zeros((1, H), jnp.float32)
    for s in range(SEQ_LEN + 1):
        h1_prev, h2_prev = h1, h2
        if s < SEQ_LEN:
            h1 = cell_l0(gi_all0[s:s + 1, :], h1_prev)
        if s >= 1:
            h2 = cell_l1(h1_prev, h2_prev)

    # fc head on the last layer-2 hidden state: (1, H) @ (H, 128_padded) + bias.
    y = jnp.dot(h2.astype(jnp.bfloat16), fcw_ref[...],
                preferred_element_type=jnp.float32) + fcb_ref[...]
    out_ref[...] = y


def pack_params(params):
    """One-time packing: transpose, pad, fold biases, fuse layer-1 weights, cast to bf16."""
    wih_l, whh_l, bih_l, bhh_l, fc_w, fc_b = params
    H, three_h = HIDDEN, 3 * HIDDEN

    # Layer 0.
    wih0_T = (jnp.zeros((H, three_h), jnp.float32)
              .at[:INPUT_DIM, :].set(wih_l[0].T.astype(jnp.float32))
              .astype(jnp.bfloat16))                                            # (128, 384)
    whh0_T = whh_l[0].T.astype(jnp.float32).astype(jnp.bfloat16)                # (128, 384)
    bih0 = bih_l[0].astype(jnp.float32)
    bhh0 = bhh_l[0].astype(jnp.float32)
    bcomb0 = (bih0.at[:2 * H].add(bhh0[:2 * H]))[None, :]                       # (1, 384)
    bhhn0 = bhh0[2 * H:][None, :]                                               # (1, 128)

    # Layer 1: fused [Wih ; Whh] with the n gate split into input/hidden column blocks.
    wih1_T = wih_l[1].T.astype(jnp.float32)                                     # (128, 384)
    whh1_T = whh_l[1].T.astype(jnp.float32)                                     # (128, 384)
    wcat1 = jnp.zeros((2 * H, 4 * H), jnp.float32)
    wcat1 = wcat1.at[:H, :2 * H].set(wih1_T[:, :2 * H])      # r|z, input rows
    wcat1 = wcat1.at[H:, :2 * H].set(whh1_T[:, :2 * H])      # r|z, hidden rows
    wcat1 = wcat1.at[:H, 2 * H:3 * H].set(wih1_T[:, 2 * H:]) # n, input rows only
    wcat1 = wcat1.at[H:, 3 * H:].set(whh1_T[:, 2 * H:])      # n, hidden rows only
    wcat1 = wcat1.astype(jnp.bfloat16)                                          # (256, 512)
    bih1 = bih_l[1].astype(jnp.float32)
    bhh1 = bhh_l[1].astype(jnp.float32)
    bcomb1 = jnp.zeros((1, 4 * H), jnp.float32)
    bcomb1 = bcomb1.at[0, :2 * H].set(bih1[:2 * H] + bhh1[:2 * H])
    bcomb1 = bcomb1.at[0, 2 * H:3 * H].set(bih1[2 * H:])
    bcomb1 = bcomb1.at[0, 3 * H:].set(bhh1[2 * H:])                             # (1, 512)

    fcw_T = (jnp.zeros((H, H), jnp.float32).at[:, :OUTPUT_DIM].set(fc_w.T)
             .astype(jnp.bfloat16))                                             # (128, 128)
    fcb_p = jnp.zeros((1, H), jnp.float32).at[0, :OUTPUT_DIM].set(fc_b)         # (1, 128)
    return (wih0_T, whh0_T, bcomb0, bhhn0, wcat1, bcomb1, fcw_T, fcb_p)


@jax.jit
def gru_forward_pallas(x, packed):
    """x: (1, SEQ_LEN, INPUT_DIM) f32, packed = pack_params(params). Returns (1, OUTPUT_DIM)."""
    wih0_T, whh0_T, bcomb0, bhhn0, wcat1, bcomb1, fcw_T, fcb_p = packed
    # Pad + cast x to bf16 in the wrapper (no in-kernel convert, half the DMA).
    x_p = (jnp.zeros((SEQ_PAD, HIDDEN), jnp.bfloat16)
           .at[:SEQ_LEN, :INPUT_DIM].set(x[0].astype(jnp.bfloat16)))

    vmem = pl.BlockSpec(memory_space=pltpu.MemorySpace.VMEM)
    out_p = pl.pallas_call(
        gru_kernel,
        out_shape=jax.ShapeDtypeStruct((1, HIDDEN), jnp.float32),
        in_specs=[vmem] * 9,
        out_specs=vmem,
    )(x_p, wih0_T, whh0_T, bcomb0, bhhn0, wcat1, bcomb1, fcw_T, fcb_p)

    return out_p[:, :OUTPUT_DIM]


def gru_forward_ref(x, params):
    """Pure-JAX f32 reference matching torch.nn.GRU + Linear semantics."""
    wih_l, whh_l, bih_l, bhh_l, fc_w, fc_b = params
    H = HIDDEN
    layer_in = x[0].astype(jnp.float32)                           # (SEQ, in)
    for l in range(NUM_LAYERS):
        h = jnp.zeros((H,), jnp.float32)
        outs = []
        for t in range(SEQ_LEN):
            xt = layer_in[t]
            gi = wih_l[l] @ xt + bih_l[l]                         # (3H,)
            gh = whh_l[l] @ h + bhh_l[l]
            r = jax.nn.sigmoid(gi[0:H] + gh[0:H])
            z = jax.nn.sigmoid(gi[H:2 * H] + gh[H:2 * H])
            n = jnp.tanh(gi[2 * H:3 * H] + r * gh[2 * H:3 * H])
            h = (1.0 - z) * n + z * h
            outs.append(h)
        layer_in = jnp.stack(outs)                                # (SEQ, H)
    return (fc_w @ layer_in[-1] + fc_b)[None, :]                  # (1, OUTPUT_DIM)


def init_params(key):
    """Deterministic init mimicking PyTorch defaults (uniform(-1/sqrt(H), 1/sqrt(H)))."""
    H, three_h = HIDDEN, 3 * HIDDEN
    k = 1.0 / np.sqrt(H)
    keys = jax.random.split(key, 4 * NUM_LAYERS + 2)
    wih_l, whh_l, bih_l, bhh_l = [], [], [], []
    ki = 0
    for l in range(NUM_LAYERS):
        in_dim = INPUT_DIM if l == 0 else H
        wih_l.append(jax.random.uniform(keys[ki], (three_h, in_dim), jnp.float32, -k, k)); ki += 1
        whh_l.append(jax.random.uniform(keys[ki], (three_h, H), jnp.float32, -k, k)); ki += 1
        bih_l.append(jax.random.uniform(keys[ki], (three_h,), jnp.float32, -k, k)); ki += 1
        bhh_l.append(jax.random.uniform(keys[ki], (three_h,), jnp.float32, -k, k)); ki += 1
    fc_w = jax.random.uniform(keys[ki], (OUTPUT_DIM, H), jnp.float32, -k, k); ki += 1
    fc_b = jax.random.uniform(keys[ki], (OUTPUT_DIM,), jnp.float32, -k, k)
    return (wih_l, whh_l, bih_l, bhh_l, fc_w, fc_b)


if __name__ == "__main__":
    key = jax.random.PRNGKey(0)
    k_x, k_p = jax.random.split(key)
    x = jax.random.normal(k_x, (1, SEQ_LEN, INPUT_DIM), jnp.float32)
    params = init_params(k_p)

    packed = pack_params(params)             # one-time packing, off the per-call path
    out = gru_forward_pallas(x, packed)
    out = jax.block_until_ready(out)

    ref = jax.block_until_ready(gru_forward_ref(x, params))
    assert out.shape == (1, OUTPUT_DIM), out.shape
    # Tolerance relaxed vs pure-f32: weights / matmul LHS are bf16 (f32 accumulation)
    # and the r/z sigmoid uses the EUP approximate reciprocal.
    np.testing.assert_allclose(np.asarray(out), np.asarray(ref), rtol=2e-2, atol=2e-2)

    print("KERNEL_OK")
</pallas_src>

<mosaic_0001>
module attributes {stable_mosaic.version = 11 : i64} {
  func.func @gru_kernel(%arg0: memref<8x128xbf16, #tpu.memory_space<vmem>>, %arg1: memref<128x384xbf16, #tpu.memory_space<vmem>>, %arg2: memref<128x384xbf16, #tpu.memory_space<vmem>>, %arg3: memref<1x384xf32, #tpu.memory_space<vmem>>, %arg4: memref<1x128xf32, #tpu.memory_space<vmem>>, %arg5: memref<256x512xbf16, #tpu.memory_space<vmem>>, %arg6: memref<1x512xf32, #tpu.memory_space<vmem>>, %arg7: memref<128x128xbf16, #tpu.memory_space<vmem>>, %arg8: memref<1x128xf32, #tpu.memory_space<vmem>>, %arg9: memref<1x128xf32, #tpu.memory_space<vmem>>) attributes {dimension_semantics = [], scalar_prefetch = 0 : i64, scratch_operands = 0 : i64, tpu.core_type = #tpu.core_type<tc>} {
    %c0 = arith.constant 0 : index
    %c0_0 = arith.constant 0 : index
    %0 = vector.load %arg2[%c0, %c0_0] : memref<128x384xbf16, #tpu.memory_space<vmem>>, vector<128x384xbf16>
    %c0_1 = arith.constant 0 : index
    %c0_2 = arith.constant 0 : index
    %1 = vector.load %arg4[%c0_1, %c0_2] : memref<1x128xf32, #tpu.memory_space<vmem>>, vector<1x128xf32>
    %c0_3 = arith.constant 0 : index
    %c0_4 = arith.constant 0 : index
    %2 = vector.load %arg5[%c0_3, %c0_4] : memref<256x512xbf16, #tpu.memory_space<vmem>>, vector<256x512xbf16>
    %c0_5 = arith.constant 0 : index
    %c0_6 = arith.constant 0 : index
    %3 = vector.load %arg6[%c0_5, %c0_6] : memref<1x512xf32, #tpu.memory_space<vmem>>, vector<1x512xf32>
    %c0_7 = arith.constant 0 : index
    %c0_8 = arith.constant 0 : index
    %4 = vector.load %arg0[%c0_7, %c0_8] : memref<8x128xbf16, #tpu.memory_space<vmem>>, vector<8x128xbf16>
    %c0_9 = arith.constant 0 : index
    %c0_10 = arith.constant 0 : index
    %5 = vector.load %arg1[%c0_9, %c0_10] : memref<128x384xbf16, #tpu.memory_space<vmem>>, vector<128x384xbf16>
    %cst = arith.constant dense<0.000000e+00> : vector<8x384xf32>
    %6 = tpu.matmul %4, %5, %cst {dimension_numbers = #tpu.dot_dimension_numbers<[1], [0], [0], [1], [0, 0, 1, 1], [], []>} : vector<8x128xbf16>, vector<128x384xbf16>, vector<8x384xf32> -> vector<8x384xf32>
    %c0_11 = arith.constant 0 : index
    %c0_12 = arith.constant 0 : index
    %7 = vector.load %arg3[%c0_11, %c0_12] : memref<1x384xf32, #tpu.memory_space<vmem>>, vector<1x384xf32>
    %8 = vector.broadcast %7 : vector<1x384xf32> to vector<8x384xf32>
    %9 = arith.addf %6, %8 : vector<8x384xf32>
    %cst_13 = arith.constant 0.000000e+00 : f32
    %10 = vector.broadcast %cst_13 : f32 to vector<1x128xf32>
    %cst_14 = arith.constant 0.000000e+00 : f32
    %11 = vector.broadcast %cst_14 : f32 to vector<1x128xf32>
    %12 = vector.extract_strided_slice %9 {offsets = [0, 0], sizes = [1, 384], strides = [1, 1]} : vector<8x384xf32> to vector<1x384xf32>
    %13 = arith.truncf %10 : vector<1x128xf32> to vector<1x128xbf16>
    %cst_15 = arith.constant dense<0.000000e+00> : vector<1x384xf32>
    %14 = tpu.matmul %13, %0, %cst_15 {dimension_numbers = #tpu.dot_dimension_numbers<[1], [0], [0], [1], [0, 0, 1, 1], [], []>} : vector<1x128xbf16>, vector<128x384xbf16>, vector<1x384xf32> -> vector<1x384xf32>
    %15 = vector.extract_strided_slice %12 {offsets = [0, 0], sizes = [1, 256], strides = [1, 1]} : vector<1x384xf32> to vector<1x256xf32>
    %16 = vector.extract_strided_slice %14 {offsets = [0, 0], sizes = [1, 256], strides = [1, 1]} : vector<1x384xf32> to vector<1x256xf32>
    %17 = arith.addf %15, %16 : vector<1x256xf32>
    %cst_16 = arith.constant 0.000000e+00 : f32
    %18 = vector.broadcast %cst_16 : f32 to vector<1x256xf32>
    %19 = arith.subf %18, %17 : vector<1x256xf32>
    %20 = math.exp %19 : vector<1x256xf32>
    %cst_17 = arith.constant 1.000000e+00 : f32
    %21 = vector.broadcast %cst_17 : f32 to vector<1x256xf32>
    %22 = arith.addf %21, %20 : vector<1x256xf32>
    %23 = tpu.reciprocal %22 {approx = true} : vector<1x256xf32> -> vector<1x256xf32>
    %24 = vector.extract_strided_slice %23 {offsets = [0, 0], sizes = [1, 128], strides = [1, 1]} : vector<1x256xf32> to vector<1x128xf32>
    %25 = vector.extract_strided_slice %23 {offsets = [0, 128], sizes = [1, 128], strides = [1, 1]} : vector<1x256xf32> to vector<1x128xf32>
    %26 = vector.extract_strided_slice %12 {offsets = [0, 256], sizes = [1, 128], strides = [1, 1]} : vector<1x384xf32> to vector<1x128xf32>
    %27 = vector.extract_strided_slice %14 {offsets = [0, 256], sizes = [1, 128], strides = [1, 1]} : vector<1x384xf32> to vector<1x128xf32>
    %28 = arith.addf %27, %1 : vector<1x128xf32>
    %29 = arith.mulf %24, %28 : vector<1x128xf32>
    %30 = arith.addf %26, %29 : vector<1x128xf32>
    %31 = math.tanh %30 : vector<1x128xf32>
    %cst_18 = arith.constant 1.000000e+00 : f32
    %32 = vector.broadcast %cst_18 : f32 to vector<1x128xf32>
    %33 = arith.subf %32, %25 : vector<1x128xf32>
    %34 = arith.mulf %33, %31 : vector<1x128xf32>
    %35 = arith.mulf %25, %10 : vector<1x128xf32>
    %36 = arith.addf %34, %35 : vector<1x128xf32>
    %37 = vector.extract_strided_slice %9 {offsets = [1, 0], sizes = [1, 384], strides = [1, 1]} : vector<8x384xf32> to vector<1x384xf32>
    %38 = arith.truncf %36 : vector<1x128xf32> to vector<1x128xbf16>
    %cst_19 = arith.constant dense<0.000000e+00> : vector<1x384xf32>
    %39 = tpu.matmul %38, %0, %cst_19 {dimension_numbers = #tpu.dot_dimension_numbers<[1], [0], [0], [1], [0, 0, 1, 1], [], []>} : vector<1x128xbf16>, vector<128x384xbf16>, vector<1x384xf32> -> vector<1x384xf32>
    %40 = vector.extract_strided_slice %37 {offsets = [0, 0], sizes = [1, 256], strides = [1, 1]} : vector<1x384xf32> to vector<1x256xf32>
    %41 = vector.extract_strided_slice %39 {offsets = [0, 0], sizes = [1, 256], strides = [1, 1]} : vector<1x384xf32> to vector<1x256xf32>
    %42 = arith.addf %40, %41 : vector<1x256xf32>
    %cst_20 = arith.constant 0.000000e+00 : f32
    %43 = vector.broadcast %cst_20 : f32 to vector<1x256xf32>
    %44 = arith.subf %43, %42 : vector<1x256xf32>
    %45 = math.exp %44 : vector<1x256xf32>
    %cst_21 = arith.constant 1.000000e+00 : f32
    %46 = vector.broadcast %cst_21 : f32 to vector<1x256xf32>
    %47 = arith.addf %46, %45 : vector<1x256xf32>
    %48 = tpu.reciprocal %47 {approx = true} : vector<1x256xf32> -> vector<1x256xf32>
    %49 = vector.extract_strided_slice %48 {offsets = [0, 0], sizes = [1, 128], strides = [1, 1]} : vector<1x256xf32> to vector<1x128xf32>
    %50 = vector.extract_strided_slice %48 {offsets = [0, 128], sizes = [1, 128], strides = [1, 1]} : vector<1x256xf32> to vector<1x128xf32>
    %51 = vector.extract_strided_slice %37 {offsets = [0, 256], sizes = [1, 128], strides = [1, 1]} : vector<1x384xf32> to vector<1x128xf32>
    %52 = vector.extract_strided_slice %39 {offsets = [0, 256], sizes = [1, 128], strides = [1, 1]} : vector<1x384xf32> to vector<1x128xf32>
    %53 = arith.addf %52, %1 : vector<1x128xf32>
    %54 = arith.mulf %49, %53 : vector<1x128xf32>
    %55 = arith.addf %51, %54 : vector<1x128xf32>
    %56 = math.tanh %55 : vector<1x128xf32>
    %cst_22 = arith.constant 1.000000e+00 : f32
    %57 = vector.broadcast %cst_22 : f32 to vector<1x128xf32>
    %58 = arith.subf %57, %50 : vector<1x128xf32>
    %59 = arith.mulf %58, %56 : vector<1x128xf32>
    %60 = arith.mulf %50, %36 : vector<1x128xf32>
    %61 = arith.addf %59, %60 : vector<1x128xf32>
    %62 = tpu.concatenate %36, %11 in 1 : vector<1x128xf32>, vector<1x128xf32> -> vector<1x256xf32>
    %63 = arith.truncf %62 : vector<1x256xf32> to vector<1x256xbf16>
    %cst_23 = arith.constant dense<0.000000e+00> : vector<1x512xf32>
    %64 = tpu.matmul %63, %2, %cst_23 {dimension_numbers = #tpu.dot_dimension_numbers<[1], [0], [0], [1], [0, 0, 1, 1], [], []>} : vector<1x256xbf16>, vector<256x512xbf16>, vector<1x512xf32> -> vector<1x512xf32>
    %65 = arith.addf %64, %3 : vector<1x512xf32>
    %66 = vector.extract_strided_slice %65 {offsets = [0, 0], sizes = [1, 256], strides = [1, 1]} : vector<1x512xf32> to vector<1x256xf32>
    %cst_24 = arith.constant 0.000000e+00 : f32
    %67 = vector.broadcast %cst_24 : f32 to vector<1x256xf32>
    %68 = arith.subf %67, %66 : vector<1x256xf32>
    %69 = math.exp %68 : vector<1x256xf32>
    %cst_25 = arith.constant 1.000000e+00 : f32
    %70 = vector.broadcast %cst_25 : f32 to vector<1x256xf32>
    %71 = arith.addf %70, %69 : vector<1x256xf32>
    %72 = tpu.reciprocal %71 {approx = true} : vector<1x256xf32> -> vector<1x256xf32>
    %73 = vector.extract_strided_slice %72 {offsets = [0, 0], sizes = [1, 128], strides = [1, 1]} : vector<1x256xf32> to vector<1x128xf32>
    %74 = vector.extract_strided_slice %72 {offsets = [0, 128], sizes = [1, 128], strides = [1, 1]} : vector<1x256xf32> to vector<1x128xf32>
    %75 = vector.extract_strided_slice %65 {offsets = [0, 256], sizes = [1, 128], strides = [1, 1]} : vector<1x512xf32> to vector<1x128xf32>
    %76 = vector.extract_strided_slice %65 {offsets = [0, 384], sizes = [1, 128], strides = [1, 1]} : vector<1x512xf32> to vector<1x128xf32>
    %77 = arith.mulf %73, %76 : vector<1x128xf32>
    %78 = arith.addf %75, %77 : vector<1x128xf32>
    %79 = math.tanh %78 : vector<1x128xf32>
    %cst_26 = arith.constant 1.000000e+00 : f32
    %80 = vector.broadcast %cst_26 : f32 to vector<1x128xf32>
    %81 = arith.subf %80, %74 : vector<1x128xf32>
    %82 = arith.mulf %81, %79 : vector<1x128xf32>
    %83 = arith.mulf %74, %11 : vector<1x128xf32>
    %84 = arith.addf %82, %83 : vector<1x128xf32>
    %85 = vector.extract_strided_slice %9 {offsets = [2, 0], sizes = [1, 384], strides = [1, 1]} : vector<8x384xf32> to vector<1x384xf32>
    %86 = arith.truncf %61 : vector<1x128xf32> to vector<1x128xbf16>
    %cst_27 = arith.constant dense<0.000000e+00> : vector<1x384xf32>
    %87 = tpu.matmul %86, %0, %cst_27 {dimension_numbers = #tpu.dot_dimension_numbers<[1], [0], [0], [1], [0, 0, 1, 1], [], []>} : vector<1x128xbf16>, vector<128x384xbf16>, vector<1x384xf32> -> vector<1x384xf32>
    %88 = vector.extract_strided_slice %85 {offsets = [0, 0], sizes = [1, 256], strides = [1, 1]} : vector<1x384xf32> to vector<1x256xf32>
    %89 = vector.extract_strided_slice %87 {offsets = [0, 0], sizes = [1, 256], strides = [1, 1]} : vector<1x384xf32> to vector<1x256xf32>
    %90 = arith.addf %88, %89 : vector<1x256xf32>
    %cst_28 = arith.constant 0.000000e+00 : f32
    %91 = vector.broadcast %cst_28 : f32 to vector<1x256xf32>
    %92 = arith.subf %91, %90 : vector<1x256xf32>
    %93 = math.exp %92 : vector<1x256xf32>
    %cst_29 = arith.constant 1.000000e+00 : f32
    %94 = vector.broadcast %cst_29 : f32 to vector<1x256xf32>
    %95 = arith.addf %94, %93 : vector<1x256xf32>
    %96 = tpu.reciprocal %95 {approx = true} : vector<1x256xf32> -> vector<1x256xf32>
    %97 = vector.extract_strided_slice %96 {offsets = [0, 0], sizes = [1, 128], strides = [1, 1]} : vector<1x256xf32> to vector<1x128xf32>
    %98 = vector.extract_strided_slice %96 {offsets = [0, 128], sizes = [1, 128], strides = [1, 1]} : vector<1x256xf32> to vector<1x128xf32>
    %99 = vector.extract_strided_slice %85 {offsets = [0, 256], sizes = [1, 128], strides = [1, 1]} : vector<1x384xf32> to vector<1x128xf32>
    %100 = vector.extract_strided_slice %87 {offsets = [0, 256], sizes = [1, 128], strides = [1, 1]} : vector<1x384xf32> to vector<1x128xf32>
    %101 = arith.addf %100, %1 : vector<1x128xf32>
    %102 = arith.mulf %97, %101 : vector<1x128xf32>
    %103 = arith.addf %99, %102 : vector<1x128xf32>
    %104 = math.tanh %103 : vector<1x128xf32>
    %cst_30 = arith.constant 1.000000e+00 : f32
    %105 = vector.broadcast %cst_30 : f32 to vector<1x128xf32>
    %106 = arith.subf %105, %98 : vector<1x128xf32>
    %107 = arith.mulf %106, %104 : vector<1x128xf32>
    %108 = arith.mulf %98, %61 : vector<1x128xf32>
    %109 = arith.addf %107, %108 : vector<1x128xf32>
    %110 = tpu.concatenate %61, %84 in 1 : vector<1x128xf32>, vector<1x128xf32> -> vector<1x256xf32>
    %111 = arith.truncf %110 : vector<1x256xf32> to vector<1x256xbf16>
    %cst_31 = arith.constant dense<0.000000e+00> : vector<1x512xf32>
    %112 = tpu.matmul %111, %2, %cst_31 {dimension_numbers = #tpu.dot_dimension_numbers<[1], [0], [0], [1], [0, 0, 1, 1], [], []>} : vector<1x256xbf16>, vector<256x512xbf16>, vector<1x512xf32> -> vector<1x512xf32>
    %113 = arith.addf %112, %3 : vector<1x512xf32>
    %114 = vector.extract_strided_slice %113 {offsets = [0, 0], sizes = [1, 256], strides = [1, 1]} : vector<1x512xf32> to vector<1x256xf32>
    %cst_32 = arith.constant 0.000000e+00 : f32
    %115 = vector.broadcast %cst_32 : f32 to vector<1x256xf32>
    %116 = arith.subf %115, %114 : vector<1x256xf32>
    %117 = math.exp %116 : vector<1x256xf32>
    %cst_33 = arith.constant 1.000000e+00 : f32
    %118 = vector.broadcast %cst_33 : f32 to vector<1x256xf32>
    %119 = arith.addf %118, %117 : vector<1x256xf32>
    %120 = tpu.reciprocal %119 {approx = true} : vector<1x256xf32> -> vector<1x256xf32>
    %121 = vector.extract_strided_slice %120 {offsets = [0, 0], sizes = [1, 128], strides = [1, 1]} : vector<1x256xf32> to vector<1x128xf32>
    %122 = vector.extract_strided_slice %120 {offsets = [0, 128], sizes = [1, 128], strides = [1, 1]} : vector<1x256xf32> to vector<1x128xf32>
    %123 = vector.extract_strided_slice %113 {offsets = [0, 256], sizes = [1, 128], strides = [1, 1]} : vector<1x512xf32> to vector<1x128xf32>
    %124 = vector.extract_strided_slice %113 {offsets = [0, 384], sizes = [1, 128], strides = [1, 1]} : vector<1x512xf32> to vector<1x128xf32>
    %125 = arith.mulf %121, %124 : vector<1x128xf32>
    %126 = arith.addf %123, %125 : vector<1x128xf32>
    %127 = math.tanh %126 : vector<1x128xf32>
    %cst_34 = arith.constant 1.000000e+00 : f32
    %128 = vector.broadcast %cst_34 : f32 to vector<1x128xf32>
    %129 = arith.subf %128, %122 : vector<1x128xf32>
    %130 = arith.mulf %129, %127 : vector<1x128xf32>
    %131 = arith.mulf %122, %84 : vector<1x128xf32>
    %132 = arith.addf %130, %131 : vector<1x128xf32>
    %133 = vector.extract_strided_slice %9 {offsets = [3, 0], sizes = [1, 384], strides = [1, 1]} : vector<8x384xf32> to vector<1x384xf32>
    %134 = arith.truncf %109 : vector<1x128xf32> to vector<1x128xbf16>
    %cst_35 = arith.constant dense<0.000000e+00> : vector<1x384xf32>
    %135 = tpu.matmul %134, %0, %cst_35 {dimension_numbers = #tpu.dot_dimension_numbers<[1], [0], [0], [1], [0, 0, 1, 1], [], []>} : vector<1x128xbf16>, vector<128x384xbf16>, vector<1x384xf32> -> vector<1x384xf32>
    %136 = vector.extract_strided_slice %133 {offsets = [0, 0], sizes = [1, 256], strides = [1, 1]} : vector<1x384xf32> to vector<1x256xf32>
    %137 = vector.extract_strided_slice %135 {offsets = [0, 0], sizes = [1, 256], strides = [1, 1]} : vector<1x384xf32> to vector<1x256xf32>
    %138 = arith.addf %136, %137 : vector<1x256xf32>
    %cst_36 = arith.constant 0.000000e+00 : f32
    %139 = vector.broadcast %cst_36 : f32 to vector<1x256xf32>
    %140 = arith.subf %139, %138 : vector<1x256xf32>
    %141 = math.exp %140 : vector<1x256xf32>
    %cst_37 = arith.constant 1.000000e+00 : f32
    %142 = vector.broadcast %cst_37 : f32 to vector<1x256xf32>
    %143 = arith.addf %142, %141 : vector<1x256xf32>
    %144 = tpu.reciprocal %143 {approx = true} : vector<1x256xf32> -> vector<1x256xf32>
    %145 = vector.extract_strided_slice %144 {offsets = [0, 0], sizes = [1, 128], strides = [1, 1]} : vector<1x256xf32> to vector<1x128xf32>
    %146 = vector.extract_strided_slice %144 {offsets = [0, 128], sizes = [1, 128], strides = [1, 1]} : vector<1x256xf32> to vector<1x128xf32>
    %147 = vector.extract_strided_slice %133 {offsets = [0, 256], sizes = [1, 128], strides = [1, 1]} : vector<1x384xf32> to vector<1x128xf32>
    %148 = vector.extract_strided_slice %135 {offsets = [0, 256], sizes = [1, 128], strides = [1, 1]} : vector<1x384xf32> to vector<1x128xf32>
    %149 = arith.addf %148, %1 : vector<1x128xf32>
    %150 = arith.mulf %145, %149 : vector<1x128xf32>
    %151 = arith.addf %147, %150 : vector<1x128xf32>
    %152 = math.tanh %151 : vector<1x128xf32>
    %cst_38 = arith.constant 1.000000e+00 : f32
    %153 = vector.broadcast %cst_38 : f32 to vector<1x128xf32>
    %154 = arith.subf %153, %146 : vector<1x128xf32>
    %155 = arith.mulf %154, %152 : vector<1x128xf32>
    %156 = arith.mulf %146, %109 : vector<1x128xf32>
    %157 = arith.addf %155, %156 : vector<1x128xf32>
    %158 = tpu.concatenate %109, %132 in 1 : vector<1x128xf32>, vector<1x128xf32> -> vector<1x256xf32>
    %159 = arith.truncf %158 : vector<1x256xf32> to vector<1x256xbf16>
    %cst_39 = arith.constant dense<0.000000e+00> : vector<1x512xf32>
    %160 = tpu.matmul %159, %2, %cst_39 {dimension_numbers = #tpu.dot_dimension_numbers<[1], [0], [0], [1], [0, 0, 1, 1], [], []>} : vector<1x256xbf16>, vector<256x512xbf16>, vector<1x512xf32> -> vector<1x512xf32>
    %161 = arith.addf %160, %3 : vector<1x512xf32>
    %162 = vector.extract_strided_slice %161 {offsets = [0, 0], sizes = [1, 256], strides = [1, 1]} : vector<1x512xf32> to vector<1x256xf32>
    %cst_40 = arith.constant 0.000000e+00 : f32
    %163 = vector.broadcast %cst_40 : f32 to vector<1x256xf32>
    %164 = arith.subf %163, %162 : vector<1x256xf32>
    %165 = math.exp %164 : vector<1x256xf32>
    %cst_41 = arith.constant 1.000000e+00 : f32
    %166 = vector.broadcast %cst_41 : f32 to vector<1x256xf32>
    %167 = arith.addf %166, %165 : vector<1x256xf32>
    %168 = tpu.reciprocal %167 {approx = true} : vector<1x256xf32> -> vector<1x256xf32>
    %169 = vector.extract_strided_slice %168 {offsets = [0, 0], sizes = [1, 128], strides = [1, 1]} : vector<1x256xf32> to vector<1x128xf32>
    %170 = vector.extract_strided_slice %168 {offsets = [0, 128], sizes = [1, 128], strides = [1, 1]} : vector<1x256xf32> to vector<1x128xf32>
    %171 = vector.extract_strided_slice %161 {offsets = [0, 256], sizes = [1, 128], strides = [1, 1]} : vector<1x512xf32> to vector<1x128xf32>
    %172 = vector.extract_strided_slice %161 {offsets = [0, 384], sizes = [1, 128], strides = [1, 1]} : vector<1x512xf32> to vector<1x128xf32>
    %173 = arith.mulf %169, %172 : vector<1x128xf32>
    %174 = arith.addf %171, %173 : vector<1x128xf32>
    %175 = math.tanh %174 : vector<1x128xf32>
    %cst_42 = arith.constant 1.000000e+00 : f32
    %176 = vector.broadcast %cst_42 : f32 to vector<1x128xf32>
    %177 = arith.subf %176, %170 : vector<1x128xf32>
    %178 = arith.mulf %177, %175 : vector<1x128xf32>
    %179 = arith.mulf %170, %132 : vector<1x128xf32>
    %180 = arith.addf %178, %179 : vector<1x128xf32>
    %181 = vector.extract_strided_slice %9 {offsets = [4, 0], sizes = [1, 384], strides = [1, 1]} : vector<8x384xf32> to vector<1x384xf32>
    %182 = arith.truncf %157 : vector<1x128xf32> to vector<1x128xbf16>
    %cst_43 = arith.constant dense<0.000000e+00> : vector<1x384xf32>
    %183 = tpu.matmul %182, %0, %cst_43 {dimension_numbers = #tpu.dot_dimension_numbers<[1], [0], [0], [1], [0, 0, 1, 1], [], []>} : vector<1x128xbf16>, vector<128x384xbf16>, vector<1x384xf32> -> vector<1x384xf32>
    %184 = vector.extract_strided_slice %181 {offsets = [0, 0], sizes = [1, 256], strides = [1, 1]} : vector<1x384xf32> to vector<1x256xf32>
    %185 = vector.extract_strided_slice %183 {offsets = [0, 0], sizes = [1, 256], strides = [1, 1]} : vector<1x384xf32> to vector<1x256xf32>
    %186 = arith.addf %184, %185 : vector<1x256xf32>
    %cst_44 = arith.constant 0.000000e+00 : f32
    %187 = vector.broadcast %cst_44 : f32 to vector<1x256xf32>
    %188 = arith.subf %187, %186 : vector<1x256xf32>
    %189 = math.exp %188 : vector<1x256xf32>
    %cst_45 = arith.constant 1.000000e+00 : f32
    %190 = vector.broadcast %cst_45 : f32 to vector<1x256xf32>
    %191 = arith.addf %190, %189 : vector<1x256xf32>
    %192 = tpu.reciprocal %191 {approx = true} : vector<1x256xf32> -> vector<1x256xf32>
    %193 = vector.extract_strided_slice %192 {offsets = [0, 0], sizes = [1, 128], strides = [1, 1]} : vector<1x256xf32> to vector<1x128xf32>
    %194 = vector.extract_strided_slice %192 {offsets = [0, 128], sizes = [1, 128], strides = [1, 1]} : vector<1x256xf32> to vector<1x128xf32>
    %195 = vector.extract_strided_slice %181 {offsets = [0, 256], sizes = [1, 128], strides = [1, 1]} : vector<1x384xf32> to vector<1x128xf32>
    %196 = vector.extract_strided_slice %183 {offsets = [0, 256], sizes = [1, 128], strides = [1, 1]} : vector<1x384xf32> to vector<1x128xf32>
    %197 = arith.addf %196, %1 : vector<1x128xf32>
    %198 = arith.mulf %193, %197 : vector<1x128xf32>
    %199 = arith.addf %195, %198 : vector<1x128xf32>
    %200 = math.tanh %199 : vector<1x128xf32>
    %cst_46 = arith.constant 1.000000e+00 : f32
    %201 = vector.broadcast %cst_46 : f32 to vector<1x128xf32>
    %202 = arith.subf %201, %194 : vector<1x128xf32>
    %203 = arith.mulf %202, %200 : vector<1x128xf32>
    %204 = arith.mulf %194, %157 : vector<1x128xf32>
    %205 = arith.addf %203, %204 : vector<1x128xf32>
    %206 = tpu.concatenate %157, %180 in 1 : vector<1x128xf32>, vector<1x128xf32> -> vector<1x256xf32>
    %207 = arith.truncf %206 : vector<1x256xf32> to vector<1x256xbf16>
    %cst_47 = arith.constant dense<0.000000e+00> : vector<1x512xf32>
    %208 = tpu.matmul %207, %2, %cst_47 {dimension_numbers = #tpu.dot_dimension_numbers<[1], [0], [0], [1], [0, 0, 1, 1], [], []>} : vector<1x256xbf16>, vector<256x512xbf16>, vector<1x512xf32> -> vector<1x512xf32>
    %209 = arith.addf %208, %3 : vector<1x512xf32>
    %210 = vector.extract_strided_slice %209 {offsets = [0, 0], sizes = [1, 256], strides = [1, 1]} : vector<1x512xf32> to vector<1x256xf32>
    %cst_48 = arith.constant 0.000000e+00 : f32
    %211 = vector.broadcast %cst_48 : f32 to vector<1x256xf32>
    %212 = arith.subf %211, %210 : vector<1x256xf32>
    %213 = math.exp %212 : vector<1x256xf32>
    %cst_49 = arith.constant 1.000000e+00 : f32
    %214 = vector.broadcast %cst_49 : f32 to vector<1x256xf32>
    %215 = arith.addf %214, %213 : vector<1x256xf32>
    %216 = tpu.reciprocal %215 {approx = true} : vector<1x256xf32> -> vector<1x256xf32>
    %217 = vector.extract_strided_slice %216 {offsets = [0, 0], sizes = [1, 128], strides = [1, 1]} : vector<1x256xf32> to vector<1x128xf32>
    %218 = vector.extract_strided_slice %216 {offsets = [0, 128], sizes = [1, 128], strides = [1, 1]} : vector<1x256xf32> to vector<1x128xf32>
    %219 = vector.extract_strided_slice %209 {offsets = [0, 256], sizes = [1, 128], strides = [1, 1]} : vector<1x512xf32> to vector<1x128xf32>
    %220 = vector.extract_strided_slice %209 {offsets = [0, 384], sizes = [1, 128], strides = [1, 1]} : vector<1x512xf32> to vector<1x128xf32>
    %221 = arith.mulf %217, %220 : vector<1x128xf32>
    %222 = arith.addf %219, %221 : vector<1x128xf32>
    %223 = math.tanh %222 : vector<1x128xf32>
    %cst_50 = arith.constant 1.000000e+00 : f32
    %224 = vector.broadcast %cst_50 : f32 to vector<1x128xf32>
    %225 = arith.subf %224, %218 : vector<1x128xf32>
    %226 = arith.mulf %225, %223 : vector<1x128xf32>
    %227 = arith.mulf %218, %180 : vector<1x128xf32>
    %228 = arith.addf %226, %227 : vector<1x128xf32>
    %229 = tpu.concatenate %205, %228 in 1 : vector<1x128xf32>, vector<1x128xf32> -> vector<1x256xf32>
    %230 = arith.truncf %229 : vector<1x256xf32> to vector<1x256xbf16>
    %cst_51 = arith.constant dense<0.000000e+00> : vector<1x512xf32>
    %231 = tpu.matmul %230, %2, %cst_51 {dimension_numbers = #tpu.dot_dimension_numbers<[1], [0], [0], [1], [0, 0, 1, 1], [], []>} : vector<1x256xbf16>, vector<256x512xbf16>, vector<1x512xf32> -> vector<1x512xf32>
    %232 = arith.addf %231, %3 : vector<1x512xf32>
    %233 = vector.extract_strided_slice %232 {offsets = [0, 0], sizes = [1, 256], strides = [1, 1]} : vector<1x512xf32> to vector<1x256xf32>
    %cst_52 = arith.constant 0.000000e+00 : f32
    %234 = vector.broadcast %cst_52 : f32 to vector<1x256xf32>
    %235 = arith.subf %234, %233 : vector<1x256xf32>
    %236 = math.exp %235 : vector<1x256xf32>
    %cst_53 = arith.constant 1.000000e+00 : f32
    %237 = vector.broadcast %cst_53 : f32 to vector<1x256xf32>
    %238 = arith.addf %237, %236 : vector<1x256xf32>
    %239 = tpu.reciprocal %238 {approx = true} : vector<1x256xf32> -> vector<1x256xf32>
    %240 = vector.extract_strided_slice %239 {offsets = [0, 0], sizes = [1, 128], strides = [1, 1]} : vector<1x256xf32> to vector<1x128xf32>
    %241 = vector.extract_strided_slice %239 {offsets = [0, 128], sizes = [1, 128], strides = [1, 1]} : vector<1x256xf32> to vector<1x128xf32>
    %242 = vector.extract_strided_slice %232 {offsets = [0, 256], sizes = [1, 128], strides = [1, 1]} : vector<1x512xf32> to vector<1x128xf32>
    %243 = vector.extract_strided_slice %232 {offsets = [0, 384], sizes = [1, 128], strides = [1, 1]} : vector<1x512xf32> to vector<1x128xf32>
    %244 = arith.mulf %240, %243 : vector<1x128xf32>
    %245 = arith.addf %242, %244 : vector<1x128xf32>
    %246 = math.tanh %245 : vector<1x128xf32>
    %cst_54 = arith.constant 1.000000e+00 : f32
    %247 = vector.broadcast %cst_54 : f32 to vector<1x128xf32>
    %248 = arith.subf %247, %241 : vector<1x128xf32>
    %249 = arith.mulf %248, %246 : vector<1x128xf32>
    %250 = arith.mulf %241, %228 : vector<1x128xf32>
    %251 = arith.addf %249, %250 : vector<1x128xf32>
    %252 = arith.truncf %251 : vector<1x128xf32> to vector<1x128xbf16>
    %c0_55 = arith.constant 0 : index
    %c0_56 = arith.constant 0 : index
    %253 = vector.load %arg7[%c0_55, %c0_56] : memref<128x128xbf16, #tpu.memory_space<vmem>>, vector<128x128xbf16>
    %cst_57 = arith.constant dense<0.000000e+00> : vector<1x128xf32>
    %254 = tpu.matmul %252, %253, %cst_57 {dimension_numbers = #tpu.dot_dimension_numbers<[1], [0], [0], [1], [0, 0, 1, 1], [], []>} : vector<1x128xbf16>, vector<128x128xbf16>, vector<1x128xf32> -> vector<1x128xf32>
    %c0_58 = arith.constant 0 : index
    %c0_59 = arith.constant 0 : index
    %255 = vector.load %arg8[%c0_58, %c0_59] : memref<1x128xf32, #tpu.memory_space<vmem>>, vector<1x128xf32>
    %256 = arith.addf %254, %255 : vector<1x128xf32>
    %c0_60 = arith.constant 0 : index
    %c0_61 = arith.constant 0 : index
    %257 = vector.load %arg9[%c0_60, %c0_61] : memref<1x128xf32, #tpu.memory_space<vmem>>, vector<1x128xf32>
    tpu.vector_store %arg9[%c0_60, %c0_61], %256 {strides = array<i32>} : memref<1x128xf32, #tpu.memory_space<vmem>>, vector<1x128xf32>,
    return
  }
}

</mosaic_0001>

<bundles_post_ra>
// kernel: gru_forward_pallas.1
= control target key start
LH: loop header
LB: loop body
LE: loop exit
PB: predicated region body
PF: predicated region fallthrough
CT: control target
= control target key end

     0   :  { %14 = vsyncpa [#allocation3], 0  ;;  %s3630_s0 = inlined_call_operand.vmem [shape: bf16[8,128], index: 0, kind: input, shape index: {}]   ;;  %s3631_s1 = inlined_call_operand.hbm [shape: bf16[128,384], index: 1, kind: input, shape index: {}]   ;;  %s3632_s2 = inlined_call_operand.hbm [shape: bf16[128,384], index: 2, kind: input, shape index: {}]   ;;  %s3633_s3 = inlined_call_operand.vmem [shape: f32[1,384], index: 3, kind: input, shape index: {}]   ;;  %s3634_s4 = inlined_call_operand.vmem [shape: f32[1,128], index: 4, kind: input, shape index: {}]   ;;  %s3635_s5 = inlined_call_operand.hbm [shape: bf16[256,512], index: 5, kind: input, shape index: {}]   ;;  %s3636_s6 = inlined_call_operand.vmem [shape: f32[1,512], index: 6, kind: input, shape index: {}]   ;;  %s3637_s7 = inlined_call_operand.hbm [shape: bf16[128,128], index: 7, kind: input, shape index: {}]   ;;  %s3638_s8 = inlined_call_operand.vmem [shape: f32[1,128], index: 8, kind: input, shape index: {}]   ;;  %s3639_s9 = inlined_call_operand.hbm [shape: f32[1,128], index: 9, kind: output, shape index: {}]  }
   0x1   :  { %15 = vsyncpa [#allocation6], 0 }
   0x2   :  { %16 = vsyncpa [#allocation9], 0 }
   0x3   :  { %17 = vsyncpa [#allocation4], 0  ;;  %s37_s11 = sshll.u32 %s3632_s2, 4  ;;  %s2801_s12 = smov [#allocation5]   ;;  %s38_s11 = int_to_ptr.hbm [resolvable:$true] %s37_s11 }
   0x4   :  { %s39_s13 = sshll.u32 %s2801_s12, 4  ;;  %s24_s16 = sshll.u32 %s3631_s1, 4  ;;  %s40_s13 = int_to_ptr.vmem [resolvable:$true] %s39_s13  ;;  %s25_s16 = int_to_ptr.hbm [resolvable:$true] %s24_s16 }
   0x5   :  { %s2802_s17 = smov 192   ;;  %s2803_s18 = smov 12  }
   0x6   :  { %45 = dma.hbm_to_vmem [thread:$0]  %s38_s11, 3072, %s40_s13, [#allocation6], %s2802_s17, %s2802_s17, %s2803_s18  }
   0x7   :  { %s2804_s19 = smov [#allocation2]   ;;  %s54_s23 = sshll.u32 %s3635_s5, 4  ;;  %s55_s23 = int_to_ptr.hbm [resolvable:$true] %s54_s23 }
   0x8   :  { %s26_s20 = sshll.u32 %s2804_s19, 4  ;;  %s2805_s2 = smov [#allocation7]   ;;  %s27_s20 = int_to_ptr.vmem [resolvable:$true] %s26_s20 }
   0x9   :  { %32 = dma.hbm_to_vmem [thread:$0]  %s25_s16, 3072, %s27_s20, [#allocation3], %s2802_s17, %s2802_s17, %s2803_s18  }
   0xa   :  { %s56_s24 = sshll.u32 %s2805_s2, 4  ;;  %s69_s1 = sshll.u32 %s3637_s7, 4  ;;  %s57_s24 = int_to_ptr.vmem [resolvable:$true] %s56_s24  ;;  %s70_s1 = int_to_ptr.hbm [resolvable:$true] %s69_s1 }
   0xb   :  { %s2806_s27 = smov 256   ;;  %s2807_s28 = smov 16  }
   0xc   :  { %62 = dma.hbm_to_vmem [thread:$0]  %s55_s23, 8192, %s57_s24, [#allocation6], %s2806_s27, %s2806_s27, %s2807_s28  }
   0xd   :  { %s2808_s29 = smov [#allocation8]   ;;  %s2809_s10 = smov 64  }
   0xe   :  { %s71_s30 = sshll.u32 %s2808_s29, 4  ;;  %s2810_s11 = smov 4   ;;  %s72_s30 = int_to_ptr.vmem [resolvable:$true] %s71_s30 }
   0xf   :  { %77 = dma.hbm_to_vmem [thread:$0]  %s70_s1, 1024, %s72_s30, [#allocation9], %s2809_s10, %s2809_s10, %s2810_s11  }
  0x10   :  { %2793 = dma.done.wait [#allocation3], 3072  }
  0x11   :  { %2794 = vsyncadd [#allocation3], 4294964224 }
  0x12   :  { %2795 = dma.done.wait [#allocation6], 11264  }
  0x13   :  { %2796 = vsyncadd [#allocation6], 4294956032 }
  0x14   :  { %2797 = dma.done.wait [#allocation9], 1024  }
  0x15   :  { %2798 = vsyncadd [#allocation9], 4294966272  ;;  %v2045_v0 = vld [vmem:[#allocation2 + $0xa8] sm:$0xf]  ;;  %v2549_v1 = vld [vmem:[#allocation2 + $0xb0] sm:$0xf0] }
  0x16   :  { %v2548_v2 = vld [vmem:[#allocation2 + $0xac] sm:$0xf]  ;;  %v2046_v3 = vor.u32 %v2549_v1, %v2045_v0  ;;  %v2047_v4 = vld [vmem:[#allocation2 + $0xb4] sm:$0xf0]  ;;  %v2033_v5 = vld [vmem:[#allocation2 + $0x90] sm:$0xf] }
  0x17   :  { %v2546_v6 = vld [vmem:[#allocation2 + $0x98] sm:$0xf0]  ;;  %v2050_v7 = vor.u32 %v2548_v2, %v2047_v4  ;;  %v2141_v8 = vld [vmem:[#allocation5 + $0xa8] sm:$0xf]  ;;  %v2461_v9 = vld [vmem:[#allocation5 + $0xb0] sm:$0xf0] }
  0x18   :  { %v2545_v10 = vld [vmem:[#allocation2 + $0x94] sm:$0xf]  ;;  %364 = vmatpush.bf16.msra.mxu0 %v2046_v3  ;;  %v2034_v11 = vor.u32 %v2546_v6, %v2033_v5  ;;  %v2876_v12 = vor.u32 %v2461_v9, %v2141_v8  ;;  %v2035_v13 = vld [vmem:[#allocation2 + $0x9c] sm:$0xf0]  ;;  %v2021_v14 = vld [vmem:[#allocation2 + $0x78] sm:$0xf] }
  0x19   :  { %377 = vmatpush.bf16.msra.mxu1 %v2050_v7  ;;  %v2038_v15 = vor.u32 %v2545_v10, %v2035_v13  ;;  %v2543_v16 = vld [vmem:[#allocation2 + $0x80] sm:$0xf0]  ;;  %v2129_v17 = vld [vmem:[#allocation5 + $0x90] sm:$0xf]  ;;  %v2458_v18 = vld [vmem:[#allocation5 + $0x98] sm:$0xf0] }
  0x1a   :  { %3781 = vst [vmem:[#allocation15_spill] sm:$0xff] %v2876_v12  ;;  %531 = vmatpush.bf16.msra.mxu3 %v2876_v12  ;;  %v2879_v19 = vor.u32 %v2458_v18, %v2129_v17  ;;  %v2542_v20 = vld [vmem:[#allocation2 + $0x7c] sm:$0xf]  ;;  %v2023_v21 = vld [vmem:[#allocation2 + $0x84] sm:$0xf0]  ;;  %v2022_v24 = vor.u32 %v2543_v16, %v2021_v14  ;;  %s2813_s18 = smov [#allocation10]  }
  0x1b   :  { %v2117_v22 = vld [vmem:[#allocation5 + $0x78] sm:$0xf]  ;;  %v2455_v23 = vld [vmem:[#allocation5 + $0x80] sm:$0xf0]  ;;  %v2026_v25 = vor.u32 %v2542_v20, %v2023_v21  ;;  %v2009_v26 = vld [vmem:[#allocation2 + $0x60] sm:$0xf] }
  0x1c   :  { %3782 = vst [vmem:[#allocation16_spill] sm:$0xff] %v2879_v19  ;;  %365 = vmatpush.bf16.msra.mxu0 %v2034_v11  ;;  %v2540_v27 = vld [vmem:[#allocation2 + $0x68] sm:$0xf0]  ;;  %v2882_v28 = vor.u32 %v2455_v23, %v2117_v22  ;;  %v2539_v29 = vld [vmem:[#allocation2 + $0x64] sm:$0xf]  ;;  %s1945_s19 = sshll.u32 %s2813_s18, 4  ;;  %s1946_s19 = int_to_ptr.vmem [resolvable:$true] %s1945_s19 }
  0x1d   :  { %378 = vmatpush.bf16.msra.mxu1 %v2038_v15  ;;  %v2011_v30 = vld [vmem:[#allocation2 + $0x6c] sm:$0xf0]  ;;  %v2105_v31 = vld [vmem:[#allocation5 + $0x60] sm:$0xf]  ;;  %v2452_v32 = vld [vmem:[#allocation5 + $0x68] sm:$0xf0]  ;;  %v2010_v33 = vor.u32 %v2540_v27, %v2009_v26 }
  0x1e   :  { %532 = vmatpush.bf16.msra.mxu3 %v2879_v19  ;;  %3783 = vst [vmem:[#allocation17_spill] sm:$0xff] %v2882_v28  ;;  %v2014_v34 = vor.u32 %v2539_v29, %v2011_v30  ;;  %v1997_v35 = vld [vmem:[#allocation2 + $0x48] sm:$0xf]  ;;  %v2537_v36 = vld [vmem:[#allocation2 + $0x50] sm:$0xf0]  ;;  %v2885_v37 = vor.u32 %v2452_v32, %v2105_v31  ;;  %s1947_s22 = sshll.u32 %s3639_s9, 4  ;;  %s1948_s22 = int_to_ptr.hbm [resolvable:$true] %s1947_s22 }
  0x1f   :  { %v2536_v38 = vld [vmem:[#allocation2 + $0x4c] sm:$0xf]  ;;  %v1999_v39 = vld [vmem:[#allocation2 + $0x54] sm:$0xf0]  ;;  %v2093_v40 = vld [vmem:[#allocation5 + $0x48] sm:$0xf]  ;;  %v1998_v44 = vor.u32 %v2537_v36, %v1997_v35 }
  0x20   :  { %366 = vmatpush.bf16.msra.mxu0 %v2022_v24  ;;  %3784 = vst [vmem:[#allocation18_spill] sm:$0xff] %v2885_v37  ;;  %v2449_v41 = vld [vmem:[#allocation5 + $0x50] sm:$0xf0]  ;;  %v2053_v42 = vld [vmem:[#allocation2 + $0xb0] sm:$0xf]  ;;  %v2002_v46 = vor.u32 %v2536_v38, %v1999_v39 }
  0x21   :  { %379 = vmatpush.bf16.msra.mxu1 %v2026_v25  ;;  %v2550_v43 = vld [vmem:[#allocation2 + $0xb8] sm:$0xf0]  ;;  %v1985_v47 = vld [vmem:[#allocation2 + $0x30] sm:$0xf]  ;;  %v2041_v49 = vld [vmem:[#allocation2 + $0x98] sm:$0xf]  ;;  %v2888_v50 = vor.u32 %v2449_v41, %v2093_v40 }
  0x22   :  { %533 = vmatpush.bf16.msra.mxu3 %v2882_v28  ;;  %v2054_v45 = vor.u32 %v2550_v43, %v2053_v42  ;;  %v2534_v48 = vld [vmem:[#allocation2 + $0x38] sm:$0xf0]  ;;  %v2533_v51 = vld [vmem:[#allocation2 + $0x34] sm:$0xf]  ;;  %v1987_v52 = vld [vmem:[#allocation2 + $0x3c] sm:$0xf0] }
  0x23   :  { %3785 = vst [vmem:[#allocation19_spill] sm:$0xff] %v2888_v50  ;;  %v2547_v53 = vld [vmem:[#allocation2 + $0xa0] sm:$0xf0]  ;;  %v2081_v54 = vld [vmem:[#allocation5 + $0x30] sm:$0xf]  ;;  %v1986_v57 = vor.u32 %v2534_v48, %v1985_v47  ;;  %v1990_v59 = vor.u32 %v2533_v51, %v1987_v52 }
  0x24   :  { %367 = vmatpush.bf16.msra.mxu0 %v2010_v33  ;;  %390 = vmatpush.bf16.msra.mxu2 %v2054_v45  ;;  %v2446_v55 = vld [vmem:[#allocation5 + $0x38] sm:$0xf0]  ;;  %v2042_v56 = vor.u32 %v2547_v53, %v2041_v49  ;;  %v2029_v58 = vld [vmem:[#allocation2 + $0x80] sm:$0xf]  ;;  %v1973_v60 = vld [vmem:[#allocation2 + $0x18] sm:$0xf] }
  0x25   :  { %380 = vmatpush.bf16.msra.mxu1 %v2014_v34  ;;  %v2531_v61 = vld [vmem:[#allocation2 + $0x20] sm:$0xf0]  ;;  %v2544_v62 = vld [vmem:[#allocation2 + $0x88] sm:$0xf0]  ;;  %v2891_v63 = vor.u32 %v2446_v55, %v2081_v54  ;;  %v2530_v0 = vld [vmem:[#allocation2 + $0x1c] sm:$0xf] }
  0x26   :  { %534 = vmatpush.bf16.msra.mxu3 %v2885_v37  ;;  %v1975_v1 = vld [vmem:[#allocation2 + $0x24] sm:$0xf0]  ;;  %v2069_v2 = vld [vmem:[#allocation5 + $0x18] sm:$0xf]  ;;  %v2030_v3 = vor.u32 %v2544_v62, %v2029_v58  ;;  %v2443_v4 = vld [vmem:[#allocation5 + $0x20] sm:$0xf0]  ;;  %v1974_v7 = vor.u32 %v2531_v61, %v1973_v60 }
  0x27   :  { %v2017_v5 = vld [vmem:[#allocation2 + $0x68] sm:$0xf]  ;;  %v2541_v6 = vld [vmem:[#allocation2 + $0x70] sm:$0xf0]  ;;  %v1961_v8 = vld [vmem:[#allocation2] sm:$0xf]  ;;  %v1978_v9 = vor.u32 %v2530_v0, %v1975_v1  ;;  %v2894_v14 = vor.u32 %v2443_v4, %v2069_v2 }
  0x28   :  { %368 = vmatpush.bf16.msra.mxu0 %v1998_v44  ;;  %391 = vmatpush.bf16.msra.mxu2 %v2042_v56  ;;  %v2528_v10 = vld [vmem:[#allocation2 + $0x8] sm:$0xf0]  ;;  %v2143_v13 = vld [vmem:[#allocation5 + $0xb4] sm:$0xf0]  ;;  %v2527_v15 = vld [vmem:[#allocation2 + $0x4] sm:$0xf]  ;;  %v2018_v18 = vor.u32 %v2541_v6, %v2017_v5 }
  0x29   :  { %381 = vmatpush.bf16.msra.mxu1 %v2002_v46  ;;  %v2460_v11 = vld [vmem:[#allocation5 + $0xac] sm:$0xf]  ;;  %v1963_v16 = vld [vmem:[#allocation2 + $0xc] sm:$0xf0]  ;;  %v2462_v20 = vld [vmem:[#allocation5 + $0xb8] sm:$0xf0]  ;;  %v1962_v23 = vor.u32 %v2528_v10, %v1961_v8 }
  0x2a   :  { %535 = vmatpush.bf16.msra.mxu3 %v2888_v50  ;;  %v2149_v17 = vld [vmem:[#allocation5 + $0xb0] sm:$0xf]  ;;  %v2057_v21 = vld [vmem:[#allocation5] sm:$0xf]  ;;  %v2440_v22 = vld [vmem:[#allocation5 + $0x8] sm:$0xf0]  ;;  %v2896_v26 = vor.u32 %v2460_v11, %v2143_v13  ;;  %v1966_v27 = vor.u32 %v2527_v15, %v1963_v16 }
  0x2b   :  { %v2005_v24 = vld [vmem:[#allocation2 + $0x50] sm:$0xf]  ;;  %v2538_v25 = vld [vmem:[#allocation2 + $0x58] sm:$0xf0]  ;;  %v2899_v29 = vor.u32 %v2462_v20, %v2149_v17  ;;  %v2457_v30 = vld [vmem:[#allocation5 + $0x94] sm:$0xf]  ;;  %v2901_v32 = vor.u32 %v2440_v22, %v2057_v21 }
  0x2c   :  { %369 = vmatpush.bf16.msra.mxu0 %v1986_v57  ;;  %392 = vmatpush.bf16.msra.mxu2 %v2030_v3  ;;  %v2131_v31 = vld [vmem:[#allocation5 + $0x9c] sm:$0xf0]  ;;  %v2137_v33 = vld [vmem:[#allocation5 + $0x98] sm:$0xf]  ;;  %v2459_v34 = vld [vmem:[#allocation5 + $0xa0] sm:$0xf0]  ;;  %v2006_v35 = vor.u32 %v2538_v25, %v2005_v24 }
  0x2d   :  { %382 = vmatpush.bf16.msra.mxu1 %v1990_v59  ;;  %v195_v36 = vld [vmem:[%s3630_s0] sm:$0xf]  ;;  %v1993_v38 = vld [vmem:[#allocation2 + $0x38] sm:$0xf]  ;;  %v2535_v39 = vld [vmem:[#allocation2 + $0x40] sm:$0xf0]  ;;  %v2907_v40 = vor.u32 %v2457_v30, %v2131_v31  ;;  %v2911_v41 = vor.u32 %v2459_v34, %v2137_v33 }
  0x2e   :  { %536 = vmatpush.bf16.msra.mxu3 %v2891_v63  ;;  %v2454_v42 = vld [vmem:[#allocation5 + $0x7c] sm:$0xf]  ;;  %v2119_v43 = vld [vmem:[#allocation5 + $0x84] sm:$0xf0]  ;;  %v2125_v44 = vld [vmem:[#allocation5 + $0x80] sm:$0xf]  ;;  %v1994_v46 = vor.u32 %v2535_v39, %v1993_v38 }
  0x2f   :  { %v2456_v45 = vld [vmem:[#allocation5 + $0x88] sm:$0xf0]  ;;  %v1981_v47 = vld [vmem:[#allocation2 + $0x20] sm:$0xf]  ;;  %v2811_v49 = vmov 0   ;;  %v2916_v51 = vor.u32 %v2454_v42, %v2119_v43 }
  0x30   :  { %370 = vmatpush.bf16.msra.mxu0 %v1974_v7  ;;  %393 = vmatpush.bf16.msra.mxu2 %v2018_v18  ;;  %v2532_v48 = vld [vmem:[#allocation2 + $0x28] sm:$0xf0]  ;;  %v2919_v52 = vor.u32 %v2456_v45, %v2125_v44  ;;  %v2451_v53 = vld [vmem:[#allocation5 + $0x64] sm:$0xf]  ;;  %v2107_v54 = vld [vmem:[#allocation5 + $0x6c] sm:$0xf0] }
  0x31   :  { %383 = vmatpush.bf16.msra.mxu1 %v1978_v9  ;;  %3786 = vst [vmem:[#allocation20_spill] sm:$0xff] %v2916_v51  ;;  %v2113_v55 = vld [vmem:[#allocation5 + $0x68] sm:$0xf]  ;;  %v2453_v56 = vld [vmem:[#allocation5 + $0x70] sm:$0xf0]  ;;  %v1982_v57 = vor.u32 %v2532_v48, %v1981_v47  ;;  %v2923_v60 = vor.u32 %v2451_v53, %v2107_v54 }
  0x32   :  { %537 = vmatpush.bf16.msra.mxu3 %v2894_v14  ;;  %3787 = vst [vmem:[#allocation21_spill] sm:$0xff] %v2919_v52  ;;  %v1969_v58 = vld [vmem:[#allocation2 + $0x8] sm:$0xf]  ;;  %v2529_v59 = vld [vmem:[#allocation2 + $0x10] sm:$0xf0]  ;;  %v2926_v61 = vor.u32 %v2453_v56, %v2113_v55 }
  0x33   :  { %3788 = vst [vmem:[#allocation22_spill] sm:$0xff] %v2923_v60  ;;  %v2448_v62 = vld [vmem:[#allocation5 + $0x4c] sm:$0xf]  ;;  %v2095_v0 = vld [vmem:[#allocation5 + $0x54] sm:$0xf0]  ;;  %v1970_v3 = vor.u32 %v2529_v59, %v1969_v58 }
  0x34   :  { %371 = vmatpush.bf16.msra.mxu0 %v1962_v23  ;;  %394 = vmatpush.bf16.msra.mxu2 %v2006_v35  ;;  %3789 = vst [vmem:[#allocation23_spill] sm:$0xff] %v2926_v61  ;;  %v2101_v1 = vld [vmem:[#allocation5 + $0x50] sm:$0xf]  ;;  %v2450_v2 = vld [vmem:[#allocation5 + $0x58] sm:$0xf0]  ;;  %v2930_v4 = vor.u32 %v2448_v62, %v2095_v0 }
  0x35   :  { %384 = vmatpush.bf16.msra.mxu1 %v1966_v27  ;;  %v2933_v5 = vor.u32 %v2450_v2, %v2101_v1  ;;  %v2445_v6 = vld [vmem:[#allocation5 + $0x34] sm:$0xf]  ;;  %v2083_v7 = vld [vmem:[#allocation5 + $0x3c] sm:$0xf0]  ;;  %v2089_v8 = vld [vmem:[#allocation5 + $0x38] sm:$0xf] }
  0x36   :  { %538 = vmatpush.bf16.msra.mxu3 %v2901_v32  ;;  %3790 = vst [vmem:[#allocation24_spill] sm:$0xff] %v2930_v4  ;;  %v2447_v9 = vld [vmem:[#allocation5 + $0x40] sm:$0xf0]  ;;  %v2938_v10 = vor.u32 %v2445_v6, %v2083_v7  ;;  %v2442_v13 = vld [vmem:[#allocation5 + $0x1c] sm:$0xf] }
  0x37   :  { %372 = vmatmul.bf16.vlgmr.msra.gmra.mxu0 %v195_v36  ;;  %3791 = vst [vmem:[#allocation25_spill] sm:$0xff] %v2933_v5  ;;  %v2941_v11 = vor.u32 %v2447_v9, %v2089_v8  ;;  %v2071_v15 = vld [vmem:[#allocation5 + $0x24] sm:$0xf0]  ;;  %v2077_v16 = vld [vmem:[#allocation5 + $0x20] sm:$0xf] }
  0x38   :  { %544 = vmatpush.bf16.msrb.mxu0 %v2896_v26  ;;  %385 = vmatmul.bf16.vlgmr.msra.gmra.mxu1 %v195_v36  ;;  %3792 = vst [vmem:[#allocation26_spill] sm:$0xff] %v2938_v10  ;;  %v2444_v17 = vld [vmem:[#allocation5 + $0x28] sm:$0xf0]  ;;  %v2946_v18 = vor.u32 %v2442_v13, %v2071_v15  ;;  %v2439_v21 = vld [vmem:[#allocation5 + $0x4] sm:$0xf] }
  0x39   :  { %557 = vmatpush.bf16.msrb.mxu1 %v2899_v29  ;;  %539 = vmatmul.bf16.vlgmr.msra.gmra.mxu3 %v2811_v49  ;;  %3793 = vst [vmem:[#allocation27_spill] sm:$0xff] %v2941_v11  ;;  %v2949_v20 = vor.u32 %v2444_v17, %v2077_v16  ;;  %v2059_v22 = vld [vmem:[#allocation5 + $0xc] sm:$0xf0]  ;;  %v2065_v23 = vld [vmem:[#allocation5 + $0x8] sm:$0xf] }
  0x3a   :  { %604 = vmatpush.bf16.msrb.mxu3 %v2896_v26  ;;  %395 = vmatpush.bf16.msra.mxu2 %v1994_v46  ;;  %3794 = vst [vmem:[#allocation28_spill] sm:$0xff] %v2946_v18  ;;  %v2441_v24 = vld [vmem:[#allocation5 + $0x10] sm:$0xf0]  ;;  %v2954_v25 = vor.u32 %v2439_v21, %v2059_v22  ;;  %v2265_v30 = vld [vmem:[#allocation7 + $0xe0] sm:$0xf] }
  0x3b   :  { %3795 = vst [vmem:[#allocation29_spill] sm:$0xff] %v2949_v20  ;;  %v2957_v27 = vor.u32 %v2441_v24, %v2065_v23  ;;  %v2493_v31 = vld [vmem:[#allocation7 + $0xec] sm:$0xf0]  ;;  %v2249_v34 = vld [vmem:[#allocation7 + $0xc0] sm:$0xf] }
  0x3c   :  { %545 = vmatpush.bf16.msrb.mxu0 %v2907_v40  ;;  %3796 = vst [vmem:[#allocation30_spill] sm:$0xff] %v2954_v25  ;;  %v2978_v33 = vor.u32 %v2493_v31, %v2265_v30  ;;  %v2489_v35 = vld [vmem:[#allocation7 + $0xcc] sm:$0xf0]  ;;  %v2233_v38 = vld [vmem:[#allocation7 + $0xa0] sm:$0xf] }
  0x3d   :  { %558 = vmatpush.bf16.msrb.mxu1 %v2911_v41  ;;  %3797 = vst [vmem:[#allocation31_spill] sm:$0xff] %v2957_v27  ;;  %v2485_v39 = vld [vmem:[#allocation7 + $0xac] sm:$0xf0]  ;;  %v2217_v43 = vld [vmem:[#allocation7 + $0x80] sm:$0xf] }
  0x3e   :  { %605 = vmatpush.bf16.msrb.mxu3 %v2907_v40  ;;  %396 = vmatpush.bf16.msra.mxu2 %v1982_v57  ;;  %v2984_v42 = vor.u32 %v2485_v39, %v2233_v38  ;;  %v2481_v44 = vld [vmem:[#allocation7 + $0x8c] sm:$0xf0]  ;;  %v2992_v46 = vld [vmem:[%s3633_s3] sm:$0x7]  ;;  %v2491_v55 = vld [vmem:[#allocation7 + $0xe4] sm:$0xf] }
  0x3f   :  { %v2987_v45 = vor.u32 %v2481_v44, %v2217_v43  ;;  %v2201_v47 = vld [vmem:[#allocation7 + $0x60] sm:$0xf]  ;;  %v2477_v48 = vld [vmem:[#allocation7 + $0x6c] sm:$0xf0]  ;;  %v2267_v56 = vld [vmem:[#allocation7 + $0xf0] sm:$0xf0] }
  0x40   :  { %546 = vmatpush.bf16.msrb.mxu0 %v2916_v51  ;;  %3799 = vst [vmem:[#allocation33_spill] sm:$0xff] %v2984_v42  ;;  %v2995_v53 = vor.u32 %v2477_v48, %v2201_v47  ;;  %v2525_v54 = vld [vmem:[#allocation7 + $0x1ec] sm:$0xf0]  ;;  %v2999_v58 = vor.u32 %v2491_v55, %v2267_v56  ;;  %v230_v59 = vperm.slane %v2992_v46, 0  ;;  %v2185_v1 = vld [vmem:[#allocation7 + $0x40] sm:$0xf] }
  0x41   :  { %559 = vmatpush.bf16.msrb.mxu1 %v2919_v52  ;;  %3800 = vst [vmem:[#allocation34_spill] sm:$0xff] %v2987_v45  ;;  %v2473_v2 = vld [vmem:[#allocation7 + $0x4c] sm:$0xf0]  ;;  %v2487_v8 = vld [vmem:[#allocation7 + $0xc4] sm:$0xf] }
  0x42   :  { %606 = vmatpush.bf16.msrb.mxu3 %v2916_v51  ;;  %397 = vmatpush.bf16.msra.mxu2 %v1970_v3  ;;  %3801 = vst [vmem:[#allocation35_spill] sm:$0xff] %v2995_v53  ;;  %v2377_v3 = vld [vmem:[#allocation7 + $0x1c0] sm:$0xf]  ;;  %v3007_v6 = vor.u32 %v2473_v2, %v2185_v1  ;;  %v2521_v7 = vld [vmem:[#allocation7 + $0x1cc] sm:$0xf0] }
  0x43   :  { %3802 = vst [vmem:[#allocation36_spill] sm:$0xff] %v2999_v58  ;;  %v2251_v9 = vld [vmem:[#allocation7 + $0xd0] sm:$0xf0]  ;;  %v3009_v13 = vor.u32 %v2521_v7, %v2377_v3  ;;  %v2523_v16 = vld [vmem:[#allocation7 + $0x1e4] sm:$0xf] }
  0x44   :  { %547 = vmatpush.bf16.msrb.mxu0 %v2923_v60  ;;  %3803 = vst [vmem:[#allocation37_spill] sm:$0xff] %v3007_v6  ;;  %v3011_v15 = vor.u32 %v2487_v8, %v2251_v9  ;;  %v2395_v17 = vld [vmem:[#allocation7 + $0x1f0] sm:$0xf0]  ;;  %v2169_v23 = vld [vmem:[#allocation7 + $0x20] sm:$0xf] }
  0x45   :  { %560 = vmatpush.bf16.msrb.mxu1 %v2926_v61  ;;  %398 = vmatmul.bf16.vlgmr.msra.gmra.mxu2 %v195_v36  ;;  %v2981_v36 = vor.u32 %v2489_v35, %v2249_v34  ;;  %3804 = vst [vmem:[#allocation38_spill] sm:$0xff] %v3009_v13  ;;  %v3014_v21 = vor.u32 %v2523_v16, %v2395_v17  ;;  %v2469_v24 = vld [vmem:[#allocation7 + $0x2c] sm:$0xf0]  ;;  %v2361_v30 = vld [vmem:[#allocation7 + $0x1a0] sm:$0xf] }
  0x46   :  { %591 = vmatpush.bf16.msrb.mxu2 %v2876_v12  ;;  %607 = vmatpush.bf16.msrb.mxu3 %v2923_v60  ;;  %3805 = vst [vmem:[#allocation39_spill] sm:$0xff] %v3011_v15  ;;  %v3021_v31 = vor.u32 %v2469_v24, %v2169_v23  ;;  %v2517_v34 = vld [vmem:[#allocation7 + $0x1ac] sm:$0xf0]  ;;  %v2483_v35 = vld [vmem:[#allocation7 + $0xa4] sm:$0xf] }
  0x47   :  { %3798 = vst [vmem:[#allocation32_spill] sm:$0xff] %v2981_v36  ;;  %v2235_v38 = vld [vmem:[#allocation7 + $0xb0] sm:$0xf0]  ;;  %v3023_v39 = vor.u32 %v2517_v34, %v2361_v30  ;;  %v2519_v44 = vld [vmem:[#allocation7 + $0x1c4] sm:$0xf] }
  0x48   :  { %548 = vmatpush.bf16.msrb.mxu0 %v2930_v4  ;;  %3806 = vst [vmem:[#allocation40_spill] sm:$0xff] %v3014_v21  ;;  %v3025_v43 = vor.u32 %v2483_v35, %v2235_v38  ;;  %v2379_v47 = vld [vmem:[#allocation7 + $0x1d0] sm:$0xf0]  ;;  %v2345_v1 = vld [vmem:[#allocation7 + $0x180] sm:$0xf] }
  0x49   :  { %561 = vmatpush.bf16.msrb.mxu1 %v2933_v5  ;;  %3808 = vst [vmem:[#allocation42_spill] sm:$0xff] %v3021_v31  ;;  %v2513_v3 = vld [vmem:[#allocation7 + $0x18c] sm:$0xf0]  ;;  %v2479_v7 = vld [vmem:[#allocation7 + $0x84] sm:$0xf] }
  0x4a   :  { %592 = vmatpush.bf16.msrb.mxu2 %v2879_v19  ;;  %608 = vmatpush.bf16.msrb.mxu3 %v2930_v4  ;;  %3809 = vst [vmem:[#allocation43_spill] sm:$0xff] %v3023_v39  ;;  %v2219_v8 = vld [vmem:[#allocation7 + $0x90] sm:$0xf0]  ;;  %v3036_v16 = vor.u32 %v2513_v3, %v2345_v1  ;;  %v2515_v23 = vld [vmem:[#allocation7 + $0x1a4] sm:$0xf] }
  0x4b   :  { %3810 = vst [vmem:[#allocation44_spill] sm:$0xff] %v3025_v43  ;;  %v3038_v17 = vor.u32 %v2479_v7, %v2219_v8  ;;  %v2363_v24 = vld [vmem:[#allocation7 + $0x1b0] sm:$0xf0]  ;;  %v2273_v34 = vld [vmem:[#allocation7 + $0xe8] sm:$0xf] }
  0x4c   :  { %549 = vmatpush.bf16.msrb.mxu0 %v2938_v10  ;;  %3813 = vst [vmem:[#allocation47_spill] sm:$0xff] %v3036_v16  ;;  %v3041_v30 = vor.u32 %v2515_v23, %v2363_v24  ;;  %v2494_v35 = vld [vmem:[#allocation7 + $0xf4] sm:$0xf0]  ;;  %v2347_v1 = vld [vmem:[#allocation7 + $0x190] sm:$0xf0] }
  0x4d   :  { %562 = vmatpush.bf16.msrb.mxu1 %v2941_v11  ;;  %3814 = vst [vmem:[#allocation48_spill] sm:$0xff] %v3038_v17  ;;  %v2257_v3 = vld [vmem:[#allocation7 + $0xc8] sm:$0xf]  ;;  %v2490_v7 = vld [vmem:[#allocation7 + $0xd4] sm:$0xf0] }
  0x4e   :  { %593 = vmatpush.bf16.msrb.mxu2 %v2882_v28  ;;  %609 = vmatpush.bf16.msrb.mxu3 %v2938_v10  ;;  %3815 = vst [vmem:[#allocation49_spill] sm:$0xff] %v3041_v30  ;;  %v3055_v23 = vor.u32 %v2490_v7, %v2257_v3  ;;  %v2313_v24 = vld [vmem:[#allocation7 + $0x140] sm:$0xf]  ;;  %v2486_v3 = vld [vmem:[#allocation7 + $0xb4] sm:$0xf0] }
  0x50   :  { %550 = vmatpush.bf16.msrb.mxu0 %v2946_v18  ;;  %3820 = vst [vmem:[#allocation54_spill] sm:$0xff] %v3055_v23 }
  0x51   :  { %563 = vmatpush.bf16.msrb.mxu1 %v2949_v20 }
  0x52   :  { %594 = vmatpush.bf16.msrb.mxu2 %v2885_v37  ;;  %610 = vmatpush.bf16.msrb.mxu3 %v2946_v18 }
  0x54   :  { %551 = vmatpush.bf16.msrb.mxu0 %v2954_v25 }
  0x55   :  { %564 = vmatpush.bf16.msrb.mxu1 %v2957_v27 }
  0x56   :  { %595 = vmatpush.bf16.msrb.mxu2 %v2888_v50  ;;  %611 = vmatpush.bf16.msrb.mxu3 %v2954_v25 }
  0x57   :  { %552 = vmatmul.bf16.vlgmr.msrb.gmra.mxu0 %v2811_v49 }
  0x58   :  { %617 = vmatpush.bf16.msra.mxu0 %v2899_v29  ;;  %565 = vmatmul.bf16.vlgmr.msrb.gmra.mxu1 %v2811_v49  ;;  %v2393_v49 = vld [vmem:[#allocation7 + $0x1e0] sm:$0xf] }
  0x59   :  { %992 = vmatpush.bf16.msra.mxu1 %v2978_v33  ;;  %v2997_v57 = vor.u32 %v2525_v54, %v2393_v49  ;;  %v3028_v54 = vor.u32 %v2519_v44, %v2379_v47  ;;  %v3045_v44 = vor.u32 %v2494_v35, %v2273_v34  ;;  %v2329_v47 = vld [vmem:[#allocation7 + $0x160] sm:$0xf]  ;;  %v2505_v34 = vld [vmem:[#allocation7 + $0x14c] sm:$0xf0]  ;;  %v2471_v35 = vld [vmem:[#allocation7 + $0x44] sm:$0xf] }
  0x5a   :  { %596 = vmatpush.bf16.msrb.mxu2 %v2891_v63  ;;  %1018 = vmatpush.bf16.msra.mxu3 %v2999_v58 }
  0x5b   :  { %3811 = vst [vmem:[#allocation45_spill] sm:$0xff] %v3028_v54 }
  0x5c   :  { %618 = vmatpush.bf16.msra.mxu0 %v2911_v41  ;;  %3816 = vst [vmem:[#allocation50_spill] sm:$0xff] %v3045_v44 }
  0x5d   :  { %993 = vmatpush.bf16.msra.mxu1 %v2981_v36 }
  0x5e   :  { %597 = vmatpush.bf16.msrb.mxu2 %v2894_v14  ;;  %1019 = vmatpush.bf16.msra.mxu3 %v3011_v15 }
  0x60   :  { %619 = vmatpush.bf16.msra.mxu0 %v2919_v52 }
  0x61   :  { %994 = vmatpush.bf16.msra.mxu1 %v2984_v42 }
  0x62   :  { %598 = vmatpush.bf16.msrb.mxu2 %v2901_v32  ;;  %1020 = vmatpush.bf16.msra.mxu3 %v3025_v43 }
  0x64   :  { %620 = vmatpush.bf16.msra.mxu0 %v2926_v61 }
  0x65   :  { %995 = vmatpush.bf16.msra.mxu1 %v2987_v45 }
  0x66   :  { %1005 = vmatpush.bf16.msra.mxu2 %v2997_v57  ;;  %1021 = vmatpush.bf16.msra.mxu3 %v3038_v17  ;;  %v231_v17 = vperm.slane %v2992_v46, 1 }
  0x68   :  { %621 = vmatpush.bf16.msra.mxu0 %v2933_v5 }
  0x69   :  { %996 = vmatpush.bf16.msra.mxu1 %v2995_v53 }
  0x6a   :  { %1006 = vmatpush.bf16.msra.mxu2 %v3009_v13 }
  0x6c   :  { %622 = vmatpush.bf16.msra.mxu0 %v2941_v11 }
  0x6d   :  { %997 = vmatpush.bf16.msra.mxu1 %v3007_v6 }
  0x6e   :  { %1007 = vmatpush.bf16.msra.mxu2 %v3023_v39 }
  0x70   :  { %623 = vmatpush.bf16.msra.mxu0 %v2949_v20 }
  0x71   :  { %998 = vmatpush.bf16.msra.mxu1 %v3021_v31 }
  0x72   :  { %1008 = vmatpush.bf16.msra.mxu2 %v3036_v16 }
  0x74   :  { %624 = vmatpush.bf16.msra.mxu0 %v2957_v27 }
  0x78   :  { %1031 = vmatpush.bf16.msrb.mxu0 %v3014_v21 }
  0x7c   :  { %1032 = vmatpush.bf16.msrb.mxu0 %v3028_v54 }
  0x80   :  { %1033 = vmatpush.bf16.msrb.mxu0 %v3041_v30 }
  0xb4   :  { %v373_v62 = vpop.f32.mrf.mxu0 }
  0xb5   :  { %v3003_v0 = vpop.f32.mrf.mxu1  ;;  %v3016_v22 = vadd.f32 %v373_v62, %v230_v59  ;;  %v2153_v59 = vld [vmem:[#allocation7] sm:$0xf]  ;;  %v2465_v62 = vld [vmem:[#allocation7 + $0xc] sm:$0xf0] }
  0xb6   :  { %v3034_v2 = vor.u32 %v2465_v62, %v2153_v59  ;;  %v2511_v59 = vld [vmem:[#allocation7 + $0x184] sm:$0xf] }
  0xb7   :  { %3807 = vst [vmem:[#allocation41_spill] sm:$0xff] %v3016_v22 }
  0xb8   :  { %3812 = vst [vmem:[#allocation46_spill] sm:$0xff] %v3034_v2  ;;  %999 = vmatpush.bf16.msra.mxu1 %v3034_v2 }
  0xbc   :  { %v540_v48 = vpop.f32.mrf.mxu3  ;;  %v375_v49 = vpop.f32.mrf.mxu0  ;;  %1044 = vmatpush.bf16.msrb.mxu1 %v3045_v44 }
  0xbd   :  { %v570_v55 = vadd.f32 %v540_v48, %v3016_v22  ;;  %v388_v56 = vpop.f32.mrf.mxu1  ;;  %v2509_v48 = vld [vmem:[#allocation7 + $0x16c] sm:$0xf0]  ;;  %v2467_v22 = vld [vmem:[#allocation7 + $0x24] sm:$0xf] }
  0xbe   :  { %v3048_v49 = vor.u32 %v2509_v48, %v2329_v47  ;;  %v2203_v56 = vld [vmem:[#allocation7 + $0x70] sm:$0xf0]  ;;  %v3060_v47 = vor.u32 %v2505_v34, %v2313_v24  ;;  %v2297_v24 = vld [vmem:[#allocation7 + $0x120] sm:$0xf]  ;;  %v2501_v34 = vld [vmem:[#allocation7 + $0x12c] sm:$0xf0] }
  0xbf   :  { %v572_v9 = vsub.f32 0.0, %v570_v55  ;;  %v2475_v55 = vld [vmem:[#allocation7 + $0x64] sm:$0xf]  ;;  %v2187_v48 = vld [vmem:[#allocation7 + $0x50] sm:$0xf0] }
  0xc0   :  { %3817 = vst [vmem:[#allocation51_spill] sm:$0xff] %v3048_v49  ;;  %v3051_v62 = vor.u32 %v2475_v55, %v2203_v56  ;;  %1009 = vmatpush.bf16.msra.mxu2 %v3048_v49  ;;  %v2507_v55 = vld [vmem:[#allocation7 + $0x164] sm:$0xf]  ;;  %v2331_v56 = vld [vmem:[#allocation7 + $0x170] sm:$0xf0]  ;;  %1045 = vmatpush.bf16.msrb.mxu1 %v3055_v23 }
  0xc1   :  { %v574_v38 = vmul.f32 1.442695, %v572_v9  ;;  %v3053_v9 = vor.u32 %v2511_v59, %v2347_v1  ;;  %3821 = vst [vmem:[#allocation55_spill] sm:$0xff] %v3060_v47  ;;  %v3065_v59 = vor.u32 %v2507_v55, %v2331_v56  ;;  %v2241_v1 = vld [vmem:[#allocation7 + $0xa8] sm:$0xf] }
  0xc2   :  { %3818 = vst [vmem:[#allocation52_spill] sm:$0xff] %v3051_v62  ;;  %1022 = vmatpush.bf16.msra.mxu3 %v3051_v62  ;;  %v3067_v7 = vor.u32 %v2486_v3, %v2241_v1  ;;  %v2503_v55 = vld [vmem:[#allocation7 + $0x144] sm:$0xf]  ;;  %v2315_v1 = vld [vmem:[#allocation7 + $0x150] sm:$0xf0] }
  0xc3   :  { %2572 = vpow2.f32 %v574_v38  ;;  %3819 = vst [vmem:[#allocation53_spill] sm:$0xff] %v3053_v9  ;;  %1034 = vmatpush.bf16.msrb.mxu0 %v3053_v9  ;;  %v3063_v38 = vor.u32 %v2471_v35, %v2187_v48  ;;  %v3074_v35 = vor.u32 %v2501_v34, %v2297_v24  ;;  %v2171_v48 = vld [vmem:[#allocation7 + $0x30] sm:$0xf0]  ;;  %v2225_v3 = vld [vmem:[#allocation7 + $0x88] sm:$0xf] }
  0xc4   :  { %v542_v8 = vpop.f32.mrf.mxu3  ;;  %3823 = vst [vmem:[#allocation57_spill] sm:$0xff] %v3065_v59  ;;  %1010 = vmatpush.bf16.msra.mxu2 %v3060_v47  ;;  %1046 = vmatpush.bf16.msrb.mxu1 %v3067_v7  ;;  %v3077_v56 = vor.u32 %v2467_v22, %v2171_v48  ;;  %v2482_v9 = vld [vmem:[#allocation7 + $0x94] sm:$0xf0]  ;;  %v2281_v24 = vld [vmem:[#allocation7 + $0x100] sm:$0xf] }
  0xc5   :  { %3822 = vst [vmem:[#allocation56_spill] sm:$0xff] %v3063_v38  ;;  %v3082_v30 = vor.u32 %v2482_v9, %v2225_v3  ;;  %v2497_v34 = vld [vmem:[#allocation7 + $0x10c] sm:$0xf0]  ;;  %v2463_v22 = vld [vmem:[#allocation7 + $0x4] sm:$0xf]  ;;  %v3091_v9 = vadd.f32 %v3003_v0, %v231_v17 }
  0xc6   :  { %3824 = vst [vmem:[#allocation58_spill] sm:$0xff] %v3067_v7  ;;  %1023 = vmatpush.bf16.msra.mxu3 %v3063_v38  ;;  %v3080_v38 = vor.u32 %v2503_v55, %v2315_v1  ;;  %v3088_v48 = vor.u32 %v2497_v34, %v2281_v24  ;;  %v2499_v7 = vld [vmem:[#allocation7 + $0x124] sm:$0xf]  ;;  %v2299_v55 = vld [vmem:[#allocation7 + $0x130] sm:$0xf0] }
  0xc7   :  { %1035 = vmatpush.bf16.msrb.mxu0 %v3065_v59  ;;  %3825 = vst [vmem:[#allocation59_spill] sm:$0xff] %v3074_v35  ;;  %v2155_v59 = vld [vmem:[#allocation7 + $0x10] sm:$0xf0]  ;;  %v3095_v1 = vor.u32 %v2499_v7, %v2299_v55  ;;  %v2209_v3 = vld [vmem:[#allocation7 + $0x68] sm:$0xf] }
  0xc8   :  { %v3069_v8 = vpop.f32.mrf.mxu2  ;;  %3826 = vst [vmem:[#allocation60_spill] sm:$0xff] %v3077_v56  ;;  %1011 = vmatpush.bf16.msra.mxu2 %v3074_v35  ;;  %1047 = vmatpush.bf16.msrb.mxu1 %v3082_v30  ;;  %v2495_v0 = vld [vmem:[#allocation7 + $0x104] sm:$0xf]  ;;  %v2283_v17 = vld [vmem:[#allocation7 + $0x110] sm:$0xf0] }
  0xc9   :  { %v2573_v62 = vpop.eup %2572  ;;  %3827 = vst [vmem:[#allocation61_spill] sm:$0xff] %v3080_v38  ;;  %v3104_v7 = vor.u32 %v2495_v0, %v2283_v17  ;;  %v2177_v55 = vld [vmem:[#allocation7 + $0x28] sm:$0xf] }
  0xca   :  { %3828 = vst [vmem:[#allocation62_spill] sm:$0xff] %v3082_v30  ;;  %v578_v43 = vadd.f32 1.0, %v2573_v62  ;;  %1024 = vmatpush.bf16.msra.mxu3 %v3077_v56  ;;  %v3093_v62 = vor.u32 %v2463_v22, %v2155_v59  ;;  %v2478_v56 = vld [vmem:[#allocation7 + $0x74] sm:$0xf0]  ;;  %v2193_v59 = vld [vmem:[#allocation7 + $0x48] sm:$0xf] }
  0xcb   :  { %1036 = vmatpush.bf16.msrb.mxu0 %v3080_v38  ;;  %3829 = vst [vmem:[#allocation63_spill] sm:$0xff] %v3088_v48  ;;  %v3098_v54 = vor.u32 %v2478_v56, %v2209_v3  ;;  %v2470_v3 = vld [vmem:[#allocation7 + $0x34] sm:$0xf0] }
  0xcc   :  { %3830 = vst [vmem:[#allocation64_spill] sm:$0xff] %v3091_v9  ;;  %1012 = vmatpush.bf16.msra.mxu2 %v3088_v48  ;;  %2574 = vrcp.f32 %v578_v43  ;;  %v3109_v43 = vld [vmem:[%s3634_s4] sm:$0x1]  ;;  %v3117_v0 = vor.u32 %v2470_v3, %v2177_v55 }
  0xcd   :  { %3831 = vst [vmem:[#allocation65_spill] sm:$0xff] %v3093_v62  ;;  %1048 = vmatpush.bf16.msrb.mxu1 %v3098_v54 }
  0xce   :  { %3832 = vst [vmem:[#allocation66_spill] sm:$0xff] %v3095_v1  ;;  %1025 = vmatpush.bf16.msra.mxu3 %v3093_v62  ;;  %v232_v62 = vperm.slane %v2992_v46, 2 }
  0xcf   :  { %3833 = vst [vmem:[#allocation67_spill] sm:$0xff] %v3098_v54  ;;  %1037 = vmatpush.bf16.msrb.mxu0 %v3095_v1  ;;  %v2161_v54 = vld [vmem:[#allocation7 + $0x8] sm:$0xf] }
  0xd0   :  { %v401_v23 = vpop.f32.mrf.mxu2  ;;  %3834 = vst [vmem:[#allocation68_spill] sm:$0xff] %v3104_v7 }
  0xd1   :  { %v2474_v23 = vld [vmem:[#allocation7 + $0x54] sm:$0xf0]  ;;  %3835 = vst [vmem:[#allocation69_spill] sm:$0xff] %v3109_v43 }
  0xd2   :  { %3837 = vst [vmem:[#allocation71_spill] sm:$0xff] %v3117_v0 }
  0xd3   :  { %1038 = vmatpush.bf16.msrb.mxu0 %v3104_v7 }
  0xd4   :  { %v553_v38 = vpop.f32.mrf.mxu0 }
  0xd5   :  { %v571_v24 = vadd.f32 %v553_v38, %v3091_v9  ;;  %v566_v34 = vpop.f32.mrf.mxu1  ;;  %v3111_v38 = vor.u32 %v2474_v23, %v2193_v59  ;;  %v2466_v59 = vld [vmem:[#allocation7 + $0x14] sm:$0xf0] }
  0xd6   :  { %v582_v9 = vadd.f32 %v566_v34, %v3109_v43  ;;  %v3123_v7 = vor.u32 %v2466_v59, %v2161_v54  ;;  %v2524_v54 = vld [vmem:[#allocation7 + $0x1ec] sm:$0xf]  ;;  %v2403_v59 = vld [vmem:[#allocation7 + $0x1f8] sm:$0xf0] }
  0xd7   :  { %v573_v22 = vsub.f32 0.0, %v571_v24  ;;  %3836 = vst [vmem:[#allocation70_spill] sm:$0xff] %v3111_v38  ;;  %1049 = vmatpush.bf16.msrb.mxu1 %v3111_v38  ;;  %v2575_v24 = vpop.eup %2574  ;;  %v2371_v38 = vld [vmem:[#allocation7 + $0x1b8] sm:$0xf0] }
  0xd8   :  { %v583_v23 = vmul.f32 %v2575_v24, %v582_v9  ;;  %3839 = vst [vmem:[#allocation73_spill] sm:$0xff] %v3123_v7  ;;  %v2401_v24 = vld [vmem:[#allocation7 + $0x1e8] sm:$0xf] }
  0xd9   :  { %v576_v56 = vmul.f32 1.442695, %v573_v22  ;;  %v3120_v22 = vadd.f32 %v3069_v8, %v232_v62  ;;  %v2526_v8 = vld [vmem:[#allocation7 + $0x1f4] sm:$0xf0]  ;;  %v2492_v62 = vld [vmem:[#allocation7 + $0xec] sm:$0xf] }
  0xdb   :  { %2576 = vpow2.f32 %v576_v56  ;;  %3838 = vst [vmem:[#allocation72_spill] sm:$0xff] %v3120_v22  ;;  %1050 = vmatpush.bf16.msrb.mxu1 %v3117_v0  ;;  %v584_v43 = vadd.f32 %v583_v23, %v3120_v22  ;;  %v2522_v22 = vld [vmem:[#allocation7 + $0x1d4] sm:$0xf0] }
  0xdc   :  { %v555_v17 = vpop.f32.mrf.mxu0 }
  0xdd   :  { %v568_v1 = vpop.f32.mrf.mxu1  ;;  %v2275_v17 = vld [vmem:[#allocation7 + $0xf8] sm:$0xf0] }
  0xdf   :  { %1051 = vmatpush.bf16.msrb.mxu1 %v3123_v7  ;;  %v2516_v7 = vld [vmem:[#allocation7 + $0x1ac] sm:$0xf] }
  0xe1   :  { %v2577_v34 = vpop.eup %2576 }
  0xe2   :  { %v579_v46 = vadd.f32 1.0, %v2577_v34  ;;  %v3133_v34 = vor.u32 %v2526_v8, %v2401_v24 }
  0xe4   :  { %2578 = vrcp.f32 %v579_v46  ;;  %v2385_v46 = vld [vmem:[#allocation7 + $0x1c8] sm:$0xf] }
  0xe5   :  { %2580 = vtanh.f32 %v584_v43  ;;  %v3135_v43 = vor.u32 %v2492_v62, %v2275_v17  ;;  %v3145_v24 = vor.u32 %v2522_v22, %v2385_v46  ;;  %v2369_v62 = vld [vmem:[#allocation7 + $0x1a8] sm:$0xf]  ;;  %v2518_v17 = vld [vmem:[#allocation7 + $0x1b4] sm:$0xf0] }
  0xe6   :  { %v3155_v22 = vor.u32 %v2518_v17, %v2369_v62 }
  0xe7   :  { %3841 = vst [vmem:[#allocation75_spill] sm:$0xff] %v3135_v43 }
  0xea   :  { %v2579_v56 = vpop.eup %2578 }
  0xeb   :  { %v586_v1 = vsub.f32 1.0, %v2579_v56  ;;  %v2581_v55 = vpop.eup %2580  ;;  %v588_v3 = vmul.f32 0.0, %v2579_v56  ;;  %v2488_v56 = vld [vmem:[#allocation7 + $0xcc] sm:$0xf] }
  0xed   :  { %v587_v9 = vmul.f32 %v2581_v55, %v586_v1  ;;  %v2259_v1 = vld [vmem:[#allocation7 + $0xd8] sm:$0xf0]  ;;  %v3137_v55 = vor.u32 %v2524_v54, %v2403_v59  ;;  %v2484_v54 = vld [vmem:[#allocation7 + $0xac] sm:$0xf] }
  0xee   :  { %v3147_v8 = vor.u32 %v2488_v56, %v2259_v1  ;;  %v2243_v59 = vld [vmem:[#allocation7 + $0xb8] sm:$0xf0]  ;;  %v2353_v56 = vld [vmem:[#allocation7 + $0x188] sm:$0xf]  ;;  %v2514_v1 = vld [vmem:[#allocation7 + $0x194] sm:$0xf0] }
  0xef   :  { %v3127_v0 = vadd.f32 %v588_v3, %v587_v9  ;;  %3842 = vst [vmem:[#allocation76_spill] sm:$0xff] %v3137_v55  ;;  %v2520_v3 = vld [vmem:[#allocation7 + $0x1cc] sm:$0xf]  ;;  %v2387_v9 = vld [vmem:[#allocation7 + $0x1d8] sm:$0xf0]  ;;  %v3157_v46 = vor.u32 %v2484_v54, %v2243_v59  ;;  %v3165_v62 = vor.u32 %v2514_v1, %v2353_v56 }
  0xf0   :  { %3843 = vst [vmem:[#allocation77_spill] sm:$0xff] %v3147_v8  ;;  %v2337_v54 = vld [vmem:[#allocation7 + $0x168] sm:$0xf]  ;;  %v2510_v59 = vld [vmem:[#allocation7 + $0x174] sm:$0xf0] }
  0xf1   :  { %3840 = vst [vmem:[#allocation74_spill] sm:$0xff] %v3127_v0  ;;  %v3131_v23 = vpack.c.bf16 %v3127_v0, %v3127_v0  ;;  %v3150_v0 = vor.u32 %v2520_v3, %v2387_v9  ;;  %v3160_v3 = vor.u32 %v2516_v7, %v2371_v38  ;;  %v2512_v9 = vld [vmem:[#allocation7 + $0x18c] sm:$0xf]  ;;  %v3175_v56 = vor.u32 %v2510_v59, %v2337_v54  ;;  %v2506_v1 = vld [vmem:[#allocation7 + $0x154] sm:$0xf0] }
  0xf2   :  { %3845 = vst [vmem:[#allocation79_spill] sm:$0xff] %v3157_v46  ;;  %v2508_v38 = vld [vmem:[#allocation7 + $0x16c] sm:$0xf]  ;;  %v2502_v54 = vld [vmem:[#allocation7 + $0x134] sm:$0xf0] }
  0xf3   :  { %599 = vmatmul.bf16.vlgmr.msrb.gmra.mxu2 %v3131_v23  ;;  %612 = vmatmul.bf16.vlgmr.msrb.gmra.mxu3 %v3131_v23  ;;  %3844 = vst [vmem:[#allocation78_spill] sm:$0xff] %v3150_v0  ;;  %v2468_v59 = vld [vmem:[#allocation7 + $0x2c] sm:$0xf] }
  0xf4   :  { %625 = vmatmul.bf16.vlgmr.msra.gmra.mxu0 %v3131_v23  ;;  %1000 = vmatmul.bf16.vlgmr.msra.gmra.mxu1 %v3131_v23  ;;  %3846 = vst [vmem:[#allocation80_spill] sm:$0xff] %v3160_v3 }
  0xf5   :  { %1057 = vmatpush.bf16.msrb.mxu2 %v3133_v34  ;;  %1070 = vmatpush.bf16.msrb.mxu3 %v3135_v43  ;;  %v2227_v43 = vld [vmem:[#allocation7 + $0x98] sm:$0xf0]  ;;  %3847 = vst [vmem:[#allocation81_spill] sm:$0xff] %v3165_v62 }
  0xf6   :  { %1083 = vmatpush.bf16.msra.mxu0 %v3137_v55  ;;  %1118 = vmatpush.bf16.msra.mxu1 %v2876_v12  ;;  %v2480_v55 = vld [vmem:[#allocation7 + $0x8c] sm:$0xf]  ;;  %v2355_v12 = vld [vmem:[#allocation7 + $0x198] sm:$0xf0] }
  0xf7   :  { %v3167_v17 = vor.u32 %v2480_v55, %v2227_v43  ;;  %v3170_v7 = vor.u32 %v2512_v9, %v2355_v12  ;;  %v2321_v55 = vld [vmem:[#allocation7 + $0x148] sm:$0xf]  ;;  %v2812_v9 = vmov 0.0|0.0  }
  0xf9   :  { %1058 = vmatpush.bf16.msrb.mxu2 %v3145_v24  ;;  %1071 = vmatpush.bf16.msrb.mxu3 %v3147_v8  ;;  %3848 = vst [vmem:[#allocation82_spill] sm:$0xff] %v3167_v17  ;;  %v2211_v8 = vld [vmem:[#allocation7 + $0x78] sm:$0xf0] }
  0xfa   :  { %1084 = vmatpush.bf16.msra.mxu0 %v3150_v0  ;;  %1119 = vmatpush.bf16.msra.mxu1 %v2879_v19  ;;  %v2476_v0 = vld [vmem:[#allocation7 + $0x6c] sm:$0xf]  ;;  %3849 = vst [vmem:[#allocation83_spill] sm:$0xff] %v3170_v7  ;;  %v2339_v19 = vld [vmem:[#allocation7 + $0x178] sm:$0xf0] }
  0xfb   :  { %v3177_v43 = vor.u32 %v2476_v0, %v2211_v8  ;;  %v3180_v12 = vor.u32 %v2508_v38, %v2339_v19  ;;  %v3187_v0 = vor.u32 %v2506_v1, %v2321_v55  ;;  %v2305_v19 = vld [vmem:[#allocation7 + $0x128] sm:$0xf]  ;;  %v2179_v38 = vld [vmem:[#allocation7 + $0x38] sm:$0xf0]  ;;  %v2498_v1 = vld [vmem:[#allocation7 + $0x114] sm:$0xf0] }
  0xfc   :  { %v3197_v55 = vor.u32 %v2502_v54, %v2305_v19 }
  0xfd   :  { %1059 = vmatpush.bf16.msrb.mxu2 %v3155_v22  ;;  %1072 = vmatpush.bf16.msrb.mxu3 %v3157_v46  ;;  %3850 = vst [vmem:[#allocation84_spill] sm:$0xff] %v3177_v43  ;;  %v2195_v46 = vld [vmem:[#allocation7 + $0x58] sm:$0xf0] }
  0xfe   :  { %1085 = vmatpush.bf16.msra.mxu0 %v3160_v3  ;;  %1120 = vmatpush.bf16.msra.mxu1 %v2882_v28  ;;  %v2472_v3 = vld [vmem:[#allocation7 + $0x4c] sm:$0xf]  ;;  %3851 = vst [vmem:[#allocation85_spill] sm:$0xff] %v3180_v12  ;;  %v2307_v28 = vld [vmem:[#allocation7 + $0x138] sm:$0xf0] }
  0xff   :  { %v3189_v8 = vor.u32 %v2472_v3, %v2195_v46  ;;  %v3199_v46 = vor.u32 %v2468_v59, %v2179_v38  ;;  %v2289_v3 = vld [vmem:[#allocation7 + $0x108] sm:$0xf] }
 0x100   :  { %v3207_v19 = vor.u32 %v2498_v1, %v2289_v3  ;;  %v3859_v38 = vld [vmem:[#allocation52_spill] sm:$0xff]  ;;  %v3860_v3 = vld [vmem:[#allocation57_spill] sm:$0xff]  ;;  %v3861_v1 = vld [vmem:[#allocation67_spill] sm:$0xff] }
 0x101   :  { %1060 = vmatpush.bf16.msrb.mxu2 %v3165_v62  ;;  %1073 = vmatpush.bf16.msrb.mxu3 %v3167_v17  ;;  %v2504_v62 = vld [vmem:[#allocation7 + $0x14c] sm:$0xf]  ;;  %v2323_v17 = vld [vmem:[#allocation7 + $0x158] sm:$0xf0] }
 0x102   :  { %1086 = vmatpush.bf16.msra.mxu0 %v3170_v7  ;;  %1121 = vmatpush.bf16.msra.mxu1 %v2885_v37  ;;  %v3192_v37 = vor.u32 %v2504_v62, %v2323_v17  ;;  %v2500_v7 = vld [vmem:[#allocation7 + $0x12c] sm:$0xf] }
 0x103   :  { %1013 = vmatmul.bf16.vlgmr.msra.gmra.mxu2 %v2812_v9  ;;  %1026 = vmatmul.bf16.vlgmr.msra.gmra.mxu3 %v3131_v23  ;;  %v3202_v62 = vor.u32 %v2500_v7, %v2307_v28  ;;  %v2496_v17 = vld [vmem:[#allocation7 + $0x10c] sm:$0xf]  ;;  %v3852_v28 = vld [vmem:[#allocation45_spill] sm:$0xff] }
 0x104   :  { %1052 = vmatmul.bf16.vlgmr.msrb.gmra.mxu1 %v3131_v23  ;;  %1039 = vmatmul.bf16.vlgmr.msrb.gmra.mxu0 %v2812_v9  ;;  %v3855_v7 = vld [vmem:[#allocation49_spill] sm:$0xff] }
 0x105   :  { %1061 = vmatpush.bf16.msrb.mxu2 %v3175_v56  ;;  %1074 = vmatpush.bf16.msrb.mxu3 %v3177_v43  ;;  %v2163_v43 = vld [vmem:[#allocation7 + $0x18] sm:$0xf0] }
 0x106   :  { %1087 = vmatpush.bf16.msra.mxu0 %v3180_v12  ;;  %1122 = vmatpush.bf16.msra.mxu1 %v2888_v50  ;;  %v2464_v12 = vld [vmem:[#allocation7 + $0xc] sm:$0xf]  ;;  %v2291_v50 = vld [vmem:[#allocation7 + $0x118] sm:$0xf0] }
 0x107   :  { %v3209_v54 = vor.u32 %v2464_v12, %v2163_v43  ;;  %v3212_v59 = vor.u32 %v2496_v17, %v2291_v50  ;;  %v3853_v50 = vld [vmem:[#allocation54_spill] sm:$0xff]  ;;  %v3857_v12 = vld [vmem:[#allocation48_spill] sm:$0xff] }
 0x108   :  { %v3856_v43 = vld [vmem:[#allocation58_spill] sm:$0xff]  ;;  %v3862_v17 = vld [vmem:[#allocation56_spill] sm:$0xff] }
 0x109   :  { %1062 = vmatpush.bf16.msrb.mxu2 %v3187_v0  ;;  %1075 = vmatpush.bf16.msrb.mxu3 %v3189_v8 }
 0x10a   :  { %1088 = vmatpush.bf16.msra.mxu0 %v3192_v37  ;;  %1123 = vmatpush.bf16.msra.mxu1 %v2891_v63 }
 0x10d   :  { %1063 = vmatpush.bf16.msrb.mxu2 %v3197_v55  ;;  %1076 = vmatpush.bf16.msrb.mxu3 %v3199_v46 }
 0x10e   :  { %1089 = vmatpush.bf16.msra.mxu0 %v3202_v62  ;;  %1124 = vmatpush.bf16.msra.mxu1 %v2894_v14 }
 0x111   :  { %1064 = vmatpush.bf16.msrb.mxu2 %v3207_v19  ;;  %1077 = vmatpush.bf16.msrb.mxu3 %v3209_v54 }
 0x112   :  { %1090 = vmatpush.bf16.msra.mxu0 %v3212_v59  ;;  %1125 = vmatpush.bf16.msra.mxu1 %v2901_v32 }
 0x114   :  { %1065 = vmatmul.bf16.vlgmr.msrb.gmra.mxu2 %v2812_v9  ;;  %1078 = vmatmul.bf16.vlgmr.msrb.gmra.mxu3 %v3131_v23  ;;  %v3854_v23 = vld [vmem:[#allocation44_spill] sm:$0xff] }
 0x115   :  { %1131 = vmatpush.bf16.msra.mxu2 %v2896_v26  ;;  %1144 = vmatpush.bf16.msra.mxu3 %v2899_v29 }
 0x116   :  { %1197 = vmatpush.bf16.msrb.mxu0 %v2978_v33  ;;  %1210 = vmatpush.bf16.msrb.mxu1 %v2997_v57 }
 0x117   :  { %1091 = vmatmul.bf16.vlgmr.msra.gmra.mxu0 %v2812_v9  ;;  %v3858_v9 = vld [vmem:[#allocation53_spill] sm:$0xff] }
 0x119   :  { %1132 = vmatpush.bf16.msra.mxu2 %v2907_v40  ;;  %1145 = vmatpush.bf16.msra.mxu3 %v2911_v41 }
 0x11a   :  { %1198 = vmatpush.bf16.msrb.mxu0 %v2981_v36  ;;  %1211 = vmatpush.bf16.msrb.mxu1 %v3009_v13 }
 0x11d   :  { %1133 = vmatpush.bf16.msra.mxu2 %v2916_v51  ;;  %1146 = vmatpush.bf16.msra.mxu3 %v2919_v52 }
 0x11e   :  { %1199 = vmatpush.bf16.msrb.mxu0 %v2984_v42  ;;  %1212 = vmatpush.bf16.msrb.mxu1 %v3023_v39 }
 0x121   :  { %1134 = vmatpush.bf16.msra.mxu2 %v2923_v60  ;;  %1147 = vmatpush.bf16.msra.mxu3 %v2926_v61 }
 0x122   :  { %1200 = vmatpush.bf16.msrb.mxu0 %v2987_v45  ;;  %1213 = vmatpush.bf16.msrb.mxu1 %v3036_v16 }
 0x125   :  { %1135 = vmatpush.bf16.msra.mxu2 %v2930_v4  ;;  %1148 = vmatpush.bf16.msra.mxu3 %v2933_v5 }
 0x126   :  { %1201 = vmatpush.bf16.msrb.mxu0 %v2995_v53  ;;  %1214 = vmatpush.bf16.msrb.mxu1 %v3048_v49 }
 0x129   :  { %1136 = vmatpush.bf16.msra.mxu2 %v2938_v10  ;;  %1149 = vmatpush.bf16.msra.mxu3 %v2941_v11 }
 0x12a   :  { %1202 = vmatpush.bf16.msrb.mxu0 %v3007_v6  ;;  %1215 = vmatpush.bf16.msrb.mxu1 %v3060_v47 }
 0x12d   :  { %1137 = vmatpush.bf16.msra.mxu2 %v2946_v18  ;;  %1150 = vmatpush.bf16.msra.mxu3 %v2949_v20 }
 0x12e   :  { %1203 = vmatpush.bf16.msrb.mxu0 %v3021_v31  ;;  %1216 = vmatpush.bf16.msrb.mxu1 %v3074_v35 }
 0x131   :  { %1138 = vmatpush.bf16.msra.mxu2 %v2954_v25  ;;  %1151 = vmatpush.bf16.msra.mxu3 %v2957_v27 }
 0x132   :  { %1204 = vmatpush.bf16.msrb.mxu0 %v3034_v2  ;;  %1217 = vmatpush.bf16.msrb.mxu1 %v3088_v48  ;;  %v3871_v48 = vld [vmem:[#allocation41_spill] sm:$0xff] }
 0x135   :  { %1223 = vmatpush.bf16.msrb.mxu2 %v2999_v58  ;;  %1236 = vmatpush.bf16.msrb.mxu3 %v3014_v21 }
 0x136   :  { %1249 = vmatpush.bf16.msra.mxu0 %v3045_v44  ;;  %v3872_v44 = vld [vmem:[#allocation64_spill] sm:$0xff] }
 0x139   :  { %1224 = vmatpush.bf16.msrb.mxu2 %v3011_v15  ;;  %1237 = vmatpush.bf16.msrb.mxu3 %v3852_v28 }
 0x13a   :  { %1250 = vmatpush.bf16.msra.mxu0 %v3853_v50  ;;  %v3863_v50 = vld [vmem:[#allocation61_spill] sm:$0xff] }
 0x13d   :  { %1225 = vmatpush.bf16.msrb.mxu2 %v3854_v23  ;;  %1238 = vmatpush.bf16.msrb.mxu3 %v3855_v7  ;;  %v3864_v23 = vld [vmem:[#allocation70_spill] sm:$0xff]  ;;  %v3865_v7 = vld [vmem:[#allocation60_spill] sm:$0xff] }
 0x13e   :  { %1251 = vmatpush.bf16.msra.mxu0 %v3856_v43  ;;  %v3866_v43 = vld [vmem:[#allocation66_spill] sm:$0xff] }
 0x141   :  { %1226 = vmatpush.bf16.msrb.mxu2 %v3857_v12  ;;  %1239 = vmatpush.bf16.msrb.mxu3 %v3858_v9  ;;  %v3867_v12 = vld [vmem:[#allocation71_spill] sm:$0xff]  ;;  %v3868_v9 = vld [vmem:[#allocation65_spill] sm:$0xff] }
 0x142   :  { %1252 = vmatpush.bf16.msra.mxu0 %v3082_v30  ;;  %v3869_v30 = vld [vmem:[#allocation68_spill] sm:$0xff] }
 0x145   :  { %1227 = vmatpush.bf16.msrb.mxu2 %v3859_v38  ;;  %1240 = vmatpush.bf16.msrb.mxu3 %v3860_v3  ;;  %v3870_v38 = vld [vmem:[#allocation73_spill] sm:$0xff] }
 0x146   :  { %1253 = vmatpush.bf16.msra.mxu0 %v3861_v1 }
 0x149   :  { %1228 = vmatpush.bf16.msrb.mxu2 %v3862_v17  ;;  %1241 = vmatpush.bf16.msrb.mxu3 %v3863_v50 }
 0x14a   :  { %1254 = vmatpush.bf16.msra.mxu0 %v3864_v23 }
 0x14d   :  { %1229 = vmatpush.bf16.msrb.mxu2 %v3865_v7  ;;  %1242 = vmatpush.bf16.msrb.mxu3 %v3866_v43 }
 0x14e   :  { %1255 = vmatpush.bf16.msra.mxu0 %v3867_v12 }
 0x151   :  { %1230 = vmatpush.bf16.msrb.mxu2 %v3868_v9  ;;  %1243 = vmatpush.bf16.msrb.mxu3 %v3869_v30  ;;  %v194_v30 = vld [vmem:[%s3636_s6] sm:$0xf] }
 0x152   :  { %1256 = vmatpush.bf16.msra.mxu0 %v3870_v38  ;;  %v3281_v35 = vperm.slane %v194_v30, 0 }
 0x154   :  { %3873 = vst [vmem:[#allocation86_spill] sm:$0xff] %v3281_v35 }
 0x171   :  { %v626_v3 = vpop.f32.mrf.mxu0  ;;  %v1001_v1 = vpop.f32.mrf.mxu1 }
 0x176   :  { %v600_v28 = vpop.f32.mrf.mxu2  ;;  %v613_v17 = vpop.f32.mrf.mxu3 }
 0x177   :  { %v632_v15 = vrot.slane %v600_v28, 7  ;;  %v633_v50 = vrot.slane %v613_v17, 7 }
 0x179   :  { %v636_v23 = vadd.f32 %v632_v15, %v3871_v48  ;;  %v637_v7 = vadd.f32 %v633_v50, %v3872_v44  ;;  %v628_v2 = vpop.f32.mrf.mxu0  ;;  %v1003_v43 = vpop.f32.mrf.mxu1  ;;  %v3283_v15 = vperm.slane %v194_v30, 1  ;;  %v1002_v50 = vadd.f32 %v1001_v1, %v3281_v35 }
 0x17b   :  { %v638_v21 = vsub.f32 0.0, %v636_v23  ;;  %v639_v12 = vsub.f32 0.0, %v637_v7  ;;  %3874 = vst [vmem:[#allocation87_spill] sm:$0xff] %v3283_v15 }
 0x17d   :  { %v640_v27 = vmul.f32 1.442695, %v638_v21  ;;  %v642_v38 = vmul.f32 1.442695, %v639_v12 }
 0x17e   :  { %v602_v9 = vpop.f32.mrf.mxu2  ;;  %v615_v58 = vpop.f32.mrf.mxu3 }
 0x17f   :  { %2582 = vpow2.f32 %v640_v27  ;;  %v3875_v58 = vld [vmem:[#allocation69_spill] sm:$0xff] }
 0x180   :  { %2584 = vpow2.f32 %v642_v38  ;;  %v648_v27 = vadd.f32 %v626_v3, %v3875_v58 }
 0x181   :  { %v1053_v28 = vpop.f32.mrf.mxu1  ;;  %v1040_v17 = vpop.f32.mrf.mxu0 }
 0x182   :  { %v650_v18 = vrot.slane %v648_v27, 7 }
 0x185   :  { %v2583_v2 = vpop.eup %2582 }
 0x186   :  { %v644_v23 = vadd.f32 1.0, %v2583_v2  ;;  %v1014_v21 = vpop.f32.mrf.mxu2  ;;  %v1027_v7 = vpop.f32.mrf.mxu3 }
 0x187   :  { %v1015_v43 = vadd.f32 %v1014_v21, %v1002_v50  ;;  %v1028_v44 = vadd.f32 %v1027_v7, %v3283_v15  ;;  %v2585_v12 = vpop.eup %2584  ;;  %v3876_v21 = vld [vmem:[#allocation72_spill] sm:$0xff] }
 0x188   :  { %2586 = vrcp.f32 %v644_v23  ;;  %v645_v38 = vadd.f32 1.0, %v2585_v12 }
 0x189   :  { %v1096_v9 = vsub.f32 0.0, %v1015_v43  ;;  %v1041_v48 = vadd.f32 %v1040_v17, %v1028_v44  ;;  %v1055_v25 = vpop.f32.mrf.mxu1  ;;  %v1042_v31 = vpop.f32.mrf.mxu0 }
 0x18a   :  { %v3289_v25 = vperm.slane %v194_v30, 3 }
 0x18b   :  { %v1098_v20 = vmul.f32 1.442695, %v1096_v9  ;;  %v1097_v47 = vsub.f32 0.0, %v1041_v48  ;;  %v3291_v48 = vperm.slane %v194_v30, 2 }
 0x18c   :  { %3877 = vst [vmem:[#allocation69_spill] sm:$0xff] %v3289_v25 }
 0x18d   :  { %2588 = vpow2.f32 %v1098_v20  ;;  %v1100_v1 = vmul.f32 1.442695, %v1097_v47 }
 0x18e   :  { %v2587_v2 = vpop.eup %2586  ;;  %v1016_v35 = vpop.f32.mrf.mxu2  ;;  %2590 = vrcp.f32 %v645_v38 }
 0x18f   :  { %v1029_v6 = vpop.f32.mrf.mxu3  ;;  %v652_v50 = vmul.f32 %v2587_v2, %v650_v18  ;;  %2592 = vpow2.f32 %v1100_v1  ;;  %v1054_v2 = vadd.f32 %v1053_v28, %v3291_v48  ;;  %v3879_v28 = vld [vmem:[#allocation75_spill] sm:$0xff] }
 0x190   :  { %v3878_v6 = vld [vmem:[#allocation74_spill] sm:$0xff] }
 0x191   :  { %v653_v23 = vadd.f32 %v652_v50, %v3876_v21  ;;  %v658_v18 = vrot.slane %v3878_v6, 7 }
 0x193   :  { %v2589_v3 = vpop.eup %2588  ;;  %2594 = vtanh.f32 %v653_v23 }
 0x194   :  { %v1092_v7 = vpop.f32.mrf.mxu0  ;;  %v1102_v44 = vadd.f32 1.0, %v2589_v3  ;;  %v2591_v31 = vpop.eup %2590 }
 0x195   :  { %v2593_v17 = vpop.eup %2592  ;;  %v655_v35 = vsub.f32 1.0, %v2591_v31  ;;  %v660_v38 = vmul.f32 %v2591_v31, %v658_v18 }
 0x196   :  { %2596 = vrcp.f32 %v1102_v44  ;;  %v1103_v27 = vadd.f32 1.0, %v2593_v17  ;;  %v3881_v17 = vld [vmem:[#allocation15_spill] sm:$0xff] }
 0x197   :  { %v1066_v20 = vpop.f32.mrf.mxu2  ;;  %v1079_v47 = vpop.f32.mrf.mxu3 }
 0x198   :  { %v1080_v43 = vadd.f32 %v1079_v47, %v3289_v25  ;;  %2598 = vrcp.f32 %v1103_v27  ;;  %v1067_v30 = vadd.f32 %v1066_v20, %v1054_v2  ;;  %v3887_v2 = vld [vmem:[#allocation17_spill] sm:$0xff] }
 0x199   :  { %v2595_v12 = vpop.eup %2594 }
 0x19a   :  { %v656_v9 = vmul.f32 %v2595_v12, %v655_v35  ;;  %v1093_v50 = vadd.f32 %v1092_v7, %v1080_v43  ;;  %v3880_v7 = vld [vmem:[#allocation76_spill] sm:$0xff]  ;;  %v3883_v43 = vld [vmem:[#allocation78_spill] sm:$0xff] }
 0x19b   :  { %v3884_v12 = vld [vmem:[#allocation16_spill] sm:$0xff] }
 0x19c   :  { %v1094_v1 = vpop.f32.mrf.mxu0  ;;  %v2597_v23 = vpop.eup %2596  ;;  %v3296_v3 = vadd.f32 %v660_v38, %v656_v9  ;;  %v3885_v9 = vld [vmem:[#allocation79_spill] sm:$0xff] }
 0x19d   :  { %v1106_v44 = vmul.f32 %v2597_v23, %v1093_v50  ;;  %v3886_v1 = vld [vmem:[#allocation80_spill] sm:$0xff]  ;;  %v3888_v23 = vld [vmem:[#allocation81_spill] sm:$0xff] }
 0x19e   :  { %v1113_v21 = vpack.c.bf16 %v3296_v3, %v3296_v3  ;;  %v2599_v31 = vpop.eup %2598 }
 0x19f   :  { %v1107_v6 = vadd.f32 %v1106_v44, %v1067_v30  ;;  %v1068_v15 = vpop.f32.mrf.mxu2  ;;  %v1081_v47 = vpop.f32.mrf.mxu3  ;;  %v1109_v20 = vsub.f32 1.0, %v2599_v31  ;;  %v1111_v18 = vmul.f32 0.0, %v2599_v31  ;;  %v3889_v30 = vld [vmem:[#allocation82_spill] sm:$0xff]  ;;  %v3892_v31 = vld [vmem:[#allocation84_spill] sm:$0xff] }
 0x1a0   :  { %v1115_v25 = vshrl.u32 %v1113_v21, 16  ;;  %v3882_v15 = vld [vmem:[#allocation77_spill] sm:$0xff]  ;;  %v3891_v47 = vld [vmem:[#allocation18_spill] sm:$0xff] }
 0x1a1   :  { %2600 = vtanh.f32 %v1107_v6  ;;  %v3890_v6 = vld [vmem:[#allocation83_spill] sm:$0xff] }
 0x1a2   :  { %1126 = vmatmul.bf16.vlgmr.msra.gmra.mxu1 %v1115_v25  ;;  %1139 = vmatmul.bf16.vlgmr.msra.gmra.mxu2 %v1115_v25 }
 0x1a3   :  { %1152 = vmatmul.bf16.vlgmr.msra.gmra.mxu3 %v1115_v25  ;;  %1205 = vmatmul.bf16.vlgmr.msrb.gmra.mxu0 %v1115_v25 }
 0x1a4   :  { %1262 = vmatpush.bf16.msra.mxu1 %v3133_v34  ;;  %1275 = vmatpush.bf16.msra.mxu2 %v3879_v28 }
 0x1a5   :  { %1288 = vmatpush.bf16.msra.mxu3 %v3880_v7  ;;  %1322 = vmatpush.bf16.msrb.mxu0 %v3881_v17 }
 0x1a7   :  { %v2601_v35 = vpop.eup %2600 }
 0x1a8   :  { %1263 = vmatpush.bf16.msra.mxu1 %v3145_v24  ;;  %1276 = vmatpush.bf16.msra.mxu2 %v3882_v15  ;;  %v1110_v21 = vmul.f32 %v2601_v35, %v1109_v20  ;;  %v3893_v20 = vld [vmem:[#allocation85_spill] sm:$0xff]  ;;  %v3894_v35 = vld [vmem:[#allocation19_spill] sm:$0xff] }
 0x1a9   :  { %1289 = vmatpush.bf16.msra.mxu3 %v3883_v43  ;;  %1323 = vmatpush.bf16.msrb.mxu0 %v3884_v12 }
 0x1aa   :  { %v3308_v27 = vadd.f32 %v1111_v18, %v1110_v21  ;;  %v3896_v21 = vld [vmem:[#allocation28_spill] sm:$0xff]  ;;  %v3897_v18 = vld [vmem:[#allocation55_spill] sm:$0xff] }
 0x1ac   :  { %1264 = vmatpush.bf16.msra.mxu1 %v3155_v22  ;;  %1277 = vmatpush.bf16.msra.mxu2 %v3885_v9  ;;  %v1190_v38 = vrot.slane %v3308_v27, 7 }
 0x1ad   :  { %1290 = vmatpush.bf16.msra.mxu3 %v3886_v1  ;;  %1324 = vmatpush.bf16.msrb.mxu0 %v3887_v2 }
 0x1ae   :  { %v1192_v50 = vpack.c.bf16 %v1190_v38, %v1190_v38  ;;  %v3898_v38 = vld [vmem:[#allocation29_spill] sm:$0xff] }
 0x1b0   :  { %1265 = vmatpush.bf16.msra.mxu1 %v3888_v23  ;;  %1278 = vmatpush.bf16.msra.mxu2 %v3889_v30  ;;  %v1194_v44 = vshrl.u32 %v1192_v50, 16  ;;  %v3899_v50 = vld [vmem:[#allocation42_spill] sm:$0xff] }
 0x1b1   :  { %1291 = vmatpush.bf16.msra.mxu3 %v3890_v6  ;;  %1325 = vmatpush.bf16.msrb.mxu0 %v3891_v47 }
 0x1b2   :  { %1218 = vmatmul.bf16.vlgmr.msrb.gmra.mxu1 %v1194_v44  ;;  %1231 = vmatmul.bf16.vlgmr.msrb.gmra.mxu2 %v1115_v25 }
 0x1b3   :  { %1244 = vmatmul.bf16.vlgmr.msrb.gmra.mxu3 %v1194_v44  ;;  %1257 = vmatmul.bf16.vlgmr.msra.gmra.mxu0 %v1115_v25 }
 0x1b4   :  { %1266 = vmatpush.bf16.msra.mxu1 %v3175_v56  ;;  %1279 = vmatpush.bf16.msra.mxu2 %v3892_v31 }
 0x1b5   :  { %1292 = vmatpush.bf16.msra.mxu3 %v3893_v20  ;;  %1326 = vmatpush.bf16.msrb.mxu0 %v3894_v35 }
 0x1b8   :  { %1267 = vmatpush.bf16.msra.mxu1 %v3187_v0  ;;  %1280 = vmatpush.bf16.msra.mxu2 %v3189_v8 }
 0x1b9   :  { %1293 = vmatpush.bf16.msra.mxu3 %v3192_v37  ;;  %1327 = vmatpush.bf16.msrb.mxu0 %v2891_v63 }
 0x1bc   :  { %1268 = vmatpush.bf16.msra.mxu1 %v3197_v55  ;;  %1281 = vmatpush.bf16.msra.mxu2 %v3199_v46 }
 0x1bd   :  { %1294 = vmatpush.bf16.msra.mxu3 %v3202_v62  ;;  %1328 = vmatpush.bf16.msrb.mxu0 %v2894_v14 }
 0x1c0   :  { %1269 = vmatpush.bf16.msra.mxu1 %v3207_v19  ;;  %1282 = vmatpush.bf16.msra.mxu2 %v3209_v54 }
 0x1c1   :  { %1295 = vmatpush.bf16.msra.mxu3 %v3212_v59  ;;  %1329 = vmatpush.bf16.msrb.mxu0 %v2901_v32 }
 0x1c3   :  { %1270 = vmatmul.bf16.vlgmr.msra.gmra.mxu1 %v1194_v44  ;;  %1283 = vmatmul.bf16.vlgmr.msra.gmra.mxu2 %v1115_v25  ;;  %v3895_v25 = vld [vmem:[#allocation37_spill] sm:$0xff] }
 0x1c4   :  { %1335 = vmatpush.bf16.msrb.mxu1 %v2896_v26  ;;  %1348 = vmatpush.bf16.msrb.mxu2 %v2899_v29 }
 0x1c5   :  { %1400 = vmatpush.bf16.msrb.mxu3 %v2978_v33  ;;  %1413 = vmatpush.bf16.msra.mxu0 %v2997_v57 }
 0x1c6   :  { %1296 = vmatmul.bf16.vlgmr.msra.gmra.mxu3 %v1194_v44  ;;  %v3900_v44 = vld [vmem:[#allocation30_spill] sm:$0xff] }
 0x1c8   :  { %1336 = vmatpush.bf16.msrb.mxu1 %v2907_v40  ;;  %1349 = vmatpush.bf16.msrb.mxu2 %v2911_v41 }
 0x1c9   :  { %1401 = vmatpush.bf16.msrb.mxu3 %v2981_v36  ;;  %1414 = vmatpush.bf16.msra.mxu0 %v3009_v13 }
 0x1cc   :  { %1337 = vmatpush.bf16.msrb.mxu1 %v2916_v51  ;;  %1350 = vmatpush.bf16.msrb.mxu2 %v2919_v52 }
 0x1cd   :  { %1402 = vmatpush.bf16.msrb.mxu3 %v2984_v42  ;;  %1415 = vmatpush.bf16.msra.mxu0 %v3023_v39 }
 0x1d0   :  { %1338 = vmatpush.bf16.msrb.mxu1 %v2923_v60  ;;  %1351 = vmatpush.bf16.msrb.mxu2 %v2926_v61 }
 0x1d1   :  { %1403 = vmatpush.bf16.msrb.mxu3 %v2987_v45  ;;  %1416 = vmatpush.bf16.msra.mxu0 %v3036_v16 }
 0x1d4   :  { %1339 = vmatpush.bf16.msrb.mxu1 %v2930_v4  ;;  %1352 = vmatpush.bf16.msrb.mxu2 %v2933_v5  ;;  %v3901_v5 = vld [vmem:[#allocation59_spill] sm:$0xff] }
 0x1d5   :  { %1404 = vmatpush.bf16.msrb.mxu3 %v2995_v53  ;;  %1417 = vmatpush.bf16.msra.mxu0 %v3048_v49  ;;  %v3902_v53 = vld [vmem:[#allocation36_spill] sm:$0xff] }
 0x1d6   :  { %v3904_v49 = vld [vmem:[#allocation40_spill] sm:$0xff] }
 0x1d8   :  { %1340 = vmatpush.bf16.msrb.mxu1 %v2938_v10  ;;  %1353 = vmatpush.bf16.msrb.mxu2 %v2941_v11  ;;  %v3903_v10 = vld [vmem:[#allocation31_spill] sm:$0xff]  ;;  %v3905_v11 = vld [vmem:[#allocation46_spill] sm:$0xff] }
 0x1d9   :  { %1405 = vmatpush.bf16.msrb.mxu3 %v3895_v25  ;;  %1418 = vmatpush.bf16.msra.mxu0 %v3897_v18  ;;  %v3906_v25 = vld [vmem:[#allocation50_spill] sm:$0xff]  ;;  %v3908_v18 = vld [vmem:[#allocation39_spill] sm:$0xff] }
 0x1dc   :  { %1341 = vmatpush.bf16.msrb.mxu1 %v3896_v21  ;;  %1354 = vmatpush.bf16.msrb.mxu2 %v3898_v38  ;;  %v3907_v21 = vld [vmem:[#allocation63_spill] sm:$0xff]  ;;  %v3909_v38 = vld [vmem:[#allocation45_spill] sm:$0xff] }
 0x1dd   :  { %1406 = vmatpush.bf16.msrb.mxu3 %v3899_v50  ;;  %1419 = vmatpush.bf16.msra.mxu0 %v3901_v5  ;;  %v3910_v50 = vld [vmem:[#allocation54_spill] sm:$0xff]  ;;  %v3912_v5 = vld [vmem:[#allocation49_spill] sm:$0xff] }
 0x1e0   :  { %1342 = vmatpush.bf16.msrb.mxu1 %v3900_v44  ;;  %1355 = vmatpush.bf16.msrb.mxu2 %v3903_v10  ;;  %v3911_v44 = vld [vmem:[#allocation44_spill] sm:$0xff] }
 0x1e1   :  { %1407 = vmatpush.bf16.msrb.mxu3 %v3905_v11  ;;  %1420 = vmatpush.bf16.msra.mxu0 %v3907_v21  ;;  %v3914_v10 = vld [vmem:[#allocation48_spill] sm:$0xff]  ;;  %v3916_v11 = vld [vmem:[#allocation62_spill] sm:$0xff]  ;;  %v3918_v21 = vld [vmem:[#allocation57_spill] sm:$0xff] }
 0x1e4   :  { %1426 = vmatpush.bf16.msra.mxu1 %v3902_v53  ;;  %1439 = vmatpush.bf16.msra.mxu2 %v3904_v49  ;;  %v3913_v53 = vld [vmem:[#allocation58_spill] sm:$0xff]  ;;  %v3915_v49 = vld [vmem:[#allocation53_spill] sm:$0xff] }
 0x1e5   :  { %1452 = vmatpush.bf16.msra.mxu3 %v3906_v25  ;;  %v3917_v25 = vld [vmem:[#allocation52_spill] sm:$0xff] }
 0x1e8   :  { %1427 = vmatpush.bf16.msra.mxu1 %v3908_v18  ;;  %1440 = vmatpush.bf16.msra.mxu2 %v3909_v38  ;;  %v3919_v18 = vld [vmem:[#allocation67_spill] sm:$0xff]  ;;  %v3920_v38 = vld [vmem:[#allocation56_spill] sm:$0xff] }
 0x1e9   :  { %1453 = vmatpush.bf16.msra.mxu3 %v3910_v50  ;;  %v3921_v50 = vld [vmem:[#allocation61_spill] sm:$0xff] }
 0x1ec   :  { %1428 = vmatpush.bf16.msra.mxu1 %v3911_v44  ;;  %1441 = vmatpush.bf16.msra.mxu2 %v3912_v5  ;;  %v3922_v44 = vld [vmem:[#allocation70_spill] sm:$0xff]  ;;  %v3923_v5 = vld [vmem:[#allocation60_spill] sm:$0xff] }
 0x1ed   :  { %1454 = vmatpush.bf16.msra.mxu3 %v3913_v53  ;;  %v3924_v53 = vld [vmem:[#allocation66_spill] sm:$0xff] }
 0x1f0   :  { %1429 = vmatpush.bf16.msra.mxu1 %v3914_v10  ;;  %1442 = vmatpush.bf16.msra.mxu2 %v3915_v49  ;;  %v3925_v10 = vld [vmem:[#allocation71_spill] sm:$0xff]  ;;  %v3926_v49 = vld [vmem:[#allocation65_spill] sm:$0xff] }
 0x1f1   :  { %1455 = vmatpush.bf16.msra.mxu3 %v3916_v11  ;;  %v3927_v11 = vld [vmem:[#allocation68_spill] sm:$0xff] }
 0x1f4   :  { %1430 = vmatpush.bf16.msra.mxu1 %v3917_v25  ;;  %1443 = vmatpush.bf16.msra.mxu2 %v3918_v21  ;;  %v3928_v25 = vld [vmem:[#allocation73_spill] sm:$0xff] }
 0x1f5   :  { %1456 = vmatpush.bf16.msra.mxu3 %v3919_v18 }
 0x1f8   :  { %1431 = vmatpush.bf16.msra.mxu1 %v3920_v38  ;;  %1444 = vmatpush.bf16.msra.mxu2 %v3921_v50  ;;  %v3929_v38 = vld [vmem:[#allocation41_spill] sm:$0xff] }
 0x1f9   :  { %1457 = vmatpush.bf16.msra.mxu3 %v3922_v44 }
 0x1fc   :  { %1432 = vmatpush.bf16.msra.mxu1 %v3923_v5  ;;  %1445 = vmatpush.bf16.msra.mxu2 %v3924_v53  ;;  %v3930_v53 = vld [vmem:[#allocation64_spill] sm:$0xff] }
 0x1fd   :  { %1458 = vmatpush.bf16.msra.mxu3 %v3925_v10 }
 0x200   :  { %1433 = vmatpush.bf16.msra.mxu1 %v3926_v49  ;;  %1446 = vmatpush.bf16.msra.mxu2 %v3927_v11 }
 0x201   :  { %1459 = vmatpush.bf16.msra.mxu3 %v3928_v25  ;;  %v3931_v25 = vld [vmem:[#allocation86_spill] sm:$0xff] }
 0x21f   :  { %v1127_v21 = vpop.f32.mrf.mxu1 }
 0x220   :  { %v1159_v18 = vrot.slane %v1127_v21, 6  ;;  %v1206_v4 = vpop.f32.mrf.mxu0 }
 0x221   :  { %v1207_v51 = vadd.f32 %v1206_v4, %v3931_v25 }
 0x222   :  { %v1163_v16 = vadd.f32 %v1159_v18, %v3929_v38 }
 0x224   :  { %v1165_v50 = vsub.f32 0.0, %v1163_v16 }
 0x225   :  { %v1140_v45 = vpop.f32.mrf.mxu2 }
 0x226   :  { %v1167_v44 = vmul.f32 1.442695, %v1165_v50  ;;  %v1160_v61 = vrot.slane %v1140_v45, 6  ;;  %v1153_v5 = vpop.f32.mrf.mxu3 }
 0x227   :  { %v1129_v60 = vpop.f32.mrf.mxu1  ;;  %v1175_v45 = vadd.f32 %v1153_v5, %v3875_v58 }
 0x228   :  { %2602 = vpow2.f32 %v1167_v44  ;;  %v1164_v10 = vadd.f32 %v1160_v61, %v3930_v53  ;;  %v1208_v39 = vpop.f32.mrf.mxu0 }
 0x22a   :  { %v1166_v49 = vsub.f32 0.0, %v1164_v10  ;;  %v1177_v10 = vrot.slane %v1175_v45, 6 }
 0x22c   :  { %v1169_v42 = vmul.f32 1.442695, %v1166_v49  ;;  %v3932_v49 = vld [vmem:[#allocation87_spill] sm:$0xff] }
 0x22d   :  { %v1142_v11 = vpop.f32.mrf.mxu2 }
 0x22e   :  { %v2603_v52 = vpop.eup %2602  ;;  %2604 = vpow2.f32 %v1169_v42  ;;  %v1155_v21 = vpop.f32.mrf.mxu3 }
 0x22f   :  { %v1171_v13 = vadd.f32 1.0, %v2603_v52  ;;  %v1219_v18 = vpop.f32.mrf.mxu1  ;;  %v3933_v21 = vld [vmem:[#allocation72_spill] sm:$0xff] }
 0x230   :  { %v1220_v16 = vadd.f32 %v1219_v18, %v1207_v51  ;;  %v1258_v38 = vpop.f32.mrf.mxu0 }
 0x231   :  { %2606 = vrcp.f32 %v1171_v13 }
 0x232   :  { %v1301_v60 = vsub.f32 0.0, %v1220_v16 }
 0x234   :  { %v2605_v50 = vpop.eup %2604  ;;  %v1303_v44 = vmul.f32 1.442695, %v1301_v60 }
 0x235   :  { %v1172_v61 = vadd.f32 1.0, %v2605_v50  ;;  %v1232_v39 = vpop.f32.mrf.mxu2 }
 0x236   :  { %v1233_v11 = vadd.f32 %v1232_v39, %v3932_v49  ;;  %v1245_v53 = vpop.f32.mrf.mxu3  ;;  %2608 = vpow2.f32 %v1303_v44  ;;  %v1185_v44 = vrot.slane %v3296_v3, 7 }
 0x237   :  { %v2607_v36 = vpop.eup %2606  ;;  %v1221_v4 = vpop.f32.mrf.mxu1  ;;  %2610 = vrcp.f32 %v1172_v61 }
 0x238   :  { %v1179_v52 = vmul.f32 %v2607_v36, %v1177_v10  ;;  %v1246_v42 = vadd.f32 %v1245_v53, %v1233_v11  ;;  %v1260_v51 = vpop.f32.mrf.mxu0 }
 0x239   :  { %v3934_v51 = vld [vmem:[#allocation69_spill] sm:$0xff] }
 0x23a   :  { %v1180_v13 = vadd.f32 %v1179_v52, %v3933_v21  ;;  %v1302_v18 = vsub.f32 0.0, %v1246_v42 }
 0x23c   :  { %2612 = vtanh.f32 %v1180_v13  ;;  %v1305_v5 = vmul.f32 1.442695, %v1302_v18  ;;  %v2609_v58 = vpop.eup %2608 }
 0x23d   :  { %v1234_v16 = vpop.f32.mrf.mxu2  ;;  %v2611_v60 = vpop.eup %2610  ;;  %v1307_v50 = vadd.f32 1.0, %v2609_v58 }
 0x23e   :  { %2614 = vpow2.f32 %v1305_v5  ;;  %v1247_v45 = vpop.f32.mrf.mxu3  ;;  %v1182_v49 = vsub.f32 1.0, %v2611_v60  ;;  %v1187_v61 = vmul.f32 %v2611_v60, %v1185_v44  ;;  %v1259_v16 = vadd.f32 %v1258_v38, %v3291_v48 }
 0x23f   :  { %2616 = vrcp.f32 %v1307_v50 }
 0x240   :  { %v1271_v39 = vpop.f32.mrf.mxu1 }
 0x242   :  { %v2613_v4 = vpop.eup %2612 }
 0x243   :  { %v1183_v36 = vmul.f32 %v2613_v4, %v1182_v49  ;;  %v1272_v49 = vadd.f32 %v1271_v39, %v1259_v16  ;;  %v3951_v16 = vld [vmem:[#allocation37_spill] sm:$0xff] }
 0x244   :  { %v2615_v53 = vpop.eup %2614 }
 0x245   :  { %v3398_v10 = vadd.f32 %v1187_v61, %v1183_v36  ;;  %v1308_v42 = vadd.f32 1.0, %v2615_v53  ;;  %v2617_v45 = vpop.eup %2616 }
 0x246   :  { %v1284_v11 = vpop.f32.mrf.mxu2 }
 0x247   :  { %v1318_v52 = vpack.c.bf16 %v3398_v10, %v3398_v10  ;;  %v1285_v13 = vadd.f32 %v1284_v11, %v3934_v51  ;;  %2618 = vrcp.f32 %v1308_v42  ;;  %v3942_v11 = vld [vmem:[#allocation23_spill] sm:$0xff]  ;;  %v3946_v42 = vld [vmem:[#allocation25_spill] sm:$0xff] }
 0x248   :  { %v1273_v5 = vpop.f32.mrf.mxu1 }
 0x249   :  { %v1297_v18 = vpop.f32.mrf.mxu3  ;;  %v1320_v58 = vrot.slane %v1318_v52, 1  ;;  %v3945_v52 = vld [vmem:[#allocation24_spill] sm:$0xff]  ;;  %v3949_v5 = vld [vmem:[#allocation26_spill] sm:$0xff] }
 0x24a   :  { %v1298_v3 = vadd.f32 %v1297_v18, %v1285_v13  ;;  %v3947_v13 = vld [vmem:[#allocation35_spill] sm:$0xff] }
 0x24b   :  { %1330 = vmatmul.bf16.vlgmr.msrb.gmra.mxu0 %v1320_v58  ;;  %1343 = vmatmul.bf16.vlgmr.msrb.gmra.mxu1 %v1320_v58  ;;  %v3948_v18 = vld [vmem:[#allocation51_spill] sm:$0xff] }
 0x24c   :  { %v1311_v60 = vmul.f32 %v2617_v45, %v1298_v3  ;;  %1356 = vmatmul.bf16.vlgmr.msrb.gmra.mxu2 %v1320_v58  ;;  %1408 = vmatmul.bf16.vlgmr.msrb.gmra.mxu3 %v1320_v58  ;;  %v3952_v3 = vld [vmem:[#allocation55_spill] sm:$0xff]  ;;  %v3953_v45 = vld [vmem:[#allocation28_spill] sm:$0xff] }
 0x24d   :  { %1478 = vmatpush.bf16.msrb.mxu1 %v3879_v28  ;;  %1465 = vmatpush.bf16.msrb.mxu0 %v3133_v34  ;;  %v2619_v4 = vpop.eup %2618 }
 0x24e   :  { %v1312_v50 = vadd.f32 %v1311_v60, %v1272_v49  ;;  %v1286_v44 = vpop.f32.mrf.mxu2  ;;  %1491 = vmatpush.bf16.msrb.mxu2 %v3880_v7  ;;  %1527 = vmatpush.bf16.msrb.mxu3 %v3881_v17  ;;  %v1314_v39 = vsub.f32 1.0, %v2619_v4  ;;  %v1316_v36 = vmul.f32 %v2619_v4, %v3308_v27  ;;  %v3954_v49 = vld [vmem:[#allocation29_spill] sm:$0xff]  ;;  %v3955_v60 = vld [vmem:[#allocation42_spill] sm:$0xff]  ;;  %v3959_v4 = vld [vmem:[#allocation31_spill] sm:$0xff] }
 0x24f   :  { %v3957_v44 = vld [vmem:[#allocation30_spill] sm:$0xff] }
 0x250   :  { %2620 = vtanh.f32 %v1312_v50  ;;  %v3956_v50 = vld [vmem:[#allocation59_spill] sm:$0xff] }
 0x251   :  { %v1299_v38 = vpop.f32.mrf.mxu3  ;;  %1479 = vmatpush.bf16.msrb.mxu1 %v3882_v15  ;;  %1466 = vmatpush.bf16.msrb.mxu0 %v3145_v24 }
 0x252   :  { %1492 = vmatpush.bf16.msrb.mxu2 %v3883_v43  ;;  %1528 = vmatpush.bf16.msrb.mxu3 %v3884_v12  ;;  %v3958_v38 = vld [vmem:[#allocation36_spill] sm:$0xff] }
 0x255   :  { %1480 = vmatpush.bf16.msrb.mxu1 %v3885_v9  ;;  %1467 = vmatpush.bf16.msrb.mxu0 %v3155_v22 }
 0x256   :  { %v2621_v61 = vpop.eup %2620  ;;  %1493 = vmatpush.bf16.msrb.mxu2 %v3886_v1  ;;  %1529 = vmatpush.bf16.msrb.mxu3 %v3887_v2 }
 0x257   :  { %v1315_v17 = vmul.f32 %v2621_v61, %v1314_v39  ;;  %v3960_v39 = vld [vmem:[#allocation40_spill] sm:$0xff]  ;;  %v3961_v61 = vld [vmem:[#allocation46_spill] sm:$0xff] }
 0x259   :  { %v3417_v53 = vadd.f32 %v1316_v36, %v1315_v17  ;;  %1481 = vmatpush.bf16.msrb.mxu1 %v3889_v30  ;;  %1468 = vmatpush.bf16.msrb.mxu0 %v3888_v23  ;;  %v3962_v36 = vld [vmem:[#allocation50_spill] sm:$0xff]  ;;  %v3963_v17 = vld [vmem:[#allocation63_spill] sm:$0xff] }
 0x25a   :  { %1494 = vmatpush.bf16.msrb.mxu2 %v3890_v6  ;;  %1530 = vmatpush.bf16.msrb.mxu3 %v3891_v47  ;;  %v3939_v47 = vld [vmem:[#allocation33_spill] sm:$0xff] }
 0x25b   :  { %v1394_v12 = vrot.slane %v3417_v53, 6  ;;  %1434 = vmatmul.bf16.vlgmr.msra.gmra.mxu1 %v1320_v58 }
 0x25c   :  { %1460 = vmatmul.bf16.vlgmr.msra.gmra.mxu3 %v1320_v58 }
 0x25d   :  { %v1396_v27 = vpack.c.bf16 %v1394_v12, %v1394_v12  ;;  %1482 = vmatpush.bf16.msrb.mxu1 %v3892_v31  ;;  %1469 = vmatpush.bf16.msrb.mxu0 %v3175_v56  ;;  %v3964_v12 = vld [vmem:[#allocation39_spill] sm:$0xff] }
 0x25e   :  { %1495 = vmatpush.bf16.msrb.mxu2 %v3893_v20  ;;  %1531 = vmatpush.bf16.msrb.mxu3 %v3894_v35  ;;  %v3940_v35 = vld [vmem:[#allocation43_spill] sm:$0xff] }
 0x25f   :  { %v1398_v2 = vrot.slane %v1396_v27, 1  ;;  %v3965_v27 = vld [vmem:[#allocation45_spill] sm:$0xff] }
 0x261   :  { %1421 = vmatmul.bf16.vlgmr.msra.gmra.mxu0 %v1398_v2  ;;  %1447 = vmatmul.bf16.vlgmr.msra.gmra.mxu2 %v1398_v2 }
 0x262   :  { %1483 = vmatpush.bf16.msrb.mxu1 %v3189_v8  ;;  %1470 = vmatpush.bf16.msrb.mxu0 %v3187_v0 }
 0x263   :  { %1496 = vmatpush.bf16.msrb.mxu2 %v3192_v37  ;;  %1532 = vmatpush.bf16.msrb.mxu3 %v2891_v63  ;;  %v3935_v63 = vld [vmem:[#allocation32_spill] sm:$0xff] }
 0x266   :  { %1484 = vmatpush.bf16.msrb.mxu1 %v3199_v46  ;;  %1471 = vmatpush.bf16.msrb.mxu0 %v3197_v55 }
 0x267   :  { %1497 = vmatpush.bf16.msrb.mxu2 %v3202_v62  ;;  %1533 = vmatpush.bf16.msrb.mxu3 %v2894_v14  ;;  %v3936_v14 = vld [vmem:[#allocation38_spill] sm:$0xff] }
 0x26a   :  { %1485 = vmatpush.bf16.msrb.mxu1 %v3209_v54  ;;  %1472 = vmatpush.bf16.msrb.mxu0 %v3207_v19 }
 0x26b   :  { %1498 = vmatpush.bf16.msrb.mxu2 %v3212_v59  ;;  %1534 = vmatpush.bf16.msrb.mxu3 %v2901_v32  ;;  %v3941_v32 = vld [vmem:[#allocation22_spill] sm:$0xff] }
 0x26d   :  { %1486 = vmatmul.bf16.vlgmr.msrb.gmra.mxu1 %v1320_v58  ;;  %v3950_v58 = vld [vmem:[#allocation27_spill] sm:$0xff] }
 0x26e   :  { %1540 = vmatpush.bf16.msra.mxu0 %v2896_v26  ;;  %1553 = vmatpush.bf16.msra.mxu1 %v2899_v29  ;;  %v3937_v26 = vld [vmem:[#allocation20_spill] sm:$0xff]  ;;  %v3938_v29 = vld [vmem:[#allocation21_spill] sm:$0xff] }
 0x26f   :  { %1607 = vmatpush.bf16.msra.mxu2 %v2978_v33  ;;  %1620 = vmatpush.bf16.msra.mxu3 %v2997_v57 }
 0x271   :  { %1473 = vmatmul.bf16.vlgmr.msrb.gmra.mxu0 %v1398_v2  ;;  %1499 = vmatmul.bf16.vlgmr.msrb.gmra.mxu2 %v1398_v2  ;;  %v3966_v2 = vld [vmem:[#allocation54_spill] sm:$0xff] }
 0x272   :  { %1541 = vmatpush.bf16.msra.mxu0 %v2907_v40  ;;  %1554 = vmatpush.bf16.msra.mxu1 %v2911_v41  ;;  %v3943_v40 = vld [vmem:[#allocation34_spill] sm:$0xff]  ;;  %v3944_v41 = vld [vmem:[#allocation47_spill] sm:$0xff] }
 0x273   :  { %1608 = vmatpush.bf16.msra.mxu2 %v3935_v63  ;;  %1621 = vmatpush.bf16.msra.mxu3 %v3936_v14 }
 0x276   :  { %1542 = vmatpush.bf16.msra.mxu0 %v3937_v26  ;;  %1555 = vmatpush.bf16.msra.mxu1 %v3938_v29  ;;  %v3967_v26 = vld [vmem:[#allocation44_spill] sm:$0xff]  ;;  %v3968_v29 = vld [vmem:[#allocation49_spill] sm:$0xff] }
 0x277   :  { %1609 = vmatpush.bf16.msra.mxu2 %v3939_v47  ;;  %1622 = vmatpush.bf16.msra.mxu3 %v3940_v35 }
 0x27a   :  { %1543 = vmatpush.bf16.msra.mxu0 %v3941_v32  ;;  %1556 = vmatpush.bf16.msra.mxu1 %v3942_v11  ;;  %v3969_v32 = vld [vmem:[#allocation58_spill] sm:$0xff]  ;;  %v3970_v11 = vld [vmem:[#allocation48_spill] sm:$0xff] }
 0x27b   :  { %1610 = vmatpush.bf16.msra.mxu2 %v3943_v40  ;;  %1623 = vmatpush.bf16.msra.mxu3 %v3944_v41  ;;  %v3985_v41 = vld [vmem:[#allocation41_spill] sm:$0xff] }
 0x27e   :  { %1544 = vmatpush.bf16.msra.mxu0 %v3945_v52  ;;  %1557 = vmatpush.bf16.msra.mxu1 %v3946_v42  ;;  %v3971_v52 = vld [vmem:[#allocation53_spill] sm:$0xff]  ;;  %v3972_v42 = vld [vmem:[#allocation62_spill] sm:$0xff] }
 0x27f   :  { %1611 = vmatpush.bf16.msra.mxu2 %v3947_v13  ;;  %1624 = vmatpush.bf16.msra.mxu3 %v3948_v18  ;;  %v3982_v18 = vld [vmem:[#allocation65_spill] sm:$0xff] }
 0x282   :  { %1545 = vmatpush.bf16.msra.mxu0 %v3949_v5  ;;  %1558 = vmatpush.bf16.msra.mxu1 %v3950_v58  ;;  %v3973_v5 = vld [vmem:[#allocation52_spill] sm:$0xff]  ;;  %v3974_v58 = vld [vmem:[#allocation57_spill] sm:$0xff] }
 0x283   :  { %1612 = vmatpush.bf16.msra.mxu2 %v3951_v16  ;;  %1625 = vmatpush.bf16.msra.mxu3 %v3952_v3  ;;  %v3981_v3 = vld [vmem:[#allocation71_spill] sm:$0xff] }
 0x286   :  { %1546 = vmatpush.bf16.msra.mxu0 %v3953_v45  ;;  %1559 = vmatpush.bf16.msra.mxu1 %v3954_v49  ;;  %v3975_v45 = vld [vmem:[#allocation67_spill] sm:$0xff]  ;;  %v3976_v49 = vld [vmem:[#allocation56_spill] sm:$0xff] }
 0x287   :  { %1613 = vmatpush.bf16.msra.mxu2 %v3955_v60  ;;  %1626 = vmatpush.bf16.msra.mxu3 %v3956_v50  ;;  %v3980_v50 = vld [vmem:[#allocation66_spill] sm:$0xff] }
 0x28a   :  { %1547 = vmatpush.bf16.msra.mxu0 %v3957_v44  ;;  %1560 = vmatpush.bf16.msra.mxu1 %v3959_v4  ;;  %v3977_v44 = vld [vmem:[#allocation61_spill] sm:$0xff]  ;;  %v3978_v4 = vld [vmem:[#allocation70_spill] sm:$0xff] }
 0x28b   :  { %1614 = vmatpush.bf16.msra.mxu2 %v3961_v61  ;;  %1627 = vmatpush.bf16.msra.mxu3 %v3963_v17  ;;  %v3979_v17 = vld [vmem:[#allocation60_spill] sm:$0xff] }
 0x28e   :  { %1633 = vmatpush.bf16.msrb.mxu0 %v3958_v38  ;;  %1646 = vmatpush.bf16.msrb.mxu1 %v3960_v39 }
 0x28f   :  { %1659 = vmatpush.bf16.msrb.mxu2 %v3962_v36 }
 0x292   :  { %1634 = vmatpush.bf16.msrb.mxu0 %v3964_v12  ;;  %1647 = vmatpush.bf16.msrb.mxu1 %v3965_v27 }
 0x293   :  { %1660 = vmatpush.bf16.msrb.mxu2 %v3966_v2 }
 0x296   :  { %1635 = vmatpush.bf16.msrb.mxu0 %v3967_v26  ;;  %1648 = vmatpush.bf16.msrb.mxu1 %v3968_v29 }
 0x297   :  { %1661 = vmatpush.bf16.msrb.mxu2 %v3969_v32 }
 0x29a   :  { %1636 = vmatpush.bf16.msrb.mxu0 %v3970_v11  ;;  %1649 = vmatpush.bf16.msrb.mxu1 %v3971_v52  ;;  %v3986_v11 = vld [vmem:[#allocation64_spill] sm:$0xff] }
 0x29b   :  { %1662 = vmatpush.bf16.msrb.mxu2 %v3972_v42  ;;  %v3983_v42 = vld [vmem:[#allocation68_spill] sm:$0xff] }
 0x29e   :  { %1637 = vmatpush.bf16.msrb.mxu0 %v3973_v5  ;;  %1650 = vmatpush.bf16.msrb.mxu1 %v3974_v58  ;;  %v3984_v5 = vld [vmem:[#allocation73_spill] sm:$0xff] }
 0x29f   :  { %1663 = vmatpush.bf16.msrb.mxu2 %v3975_v45 }
 0x2a2   :  { %1638 = vmatpush.bf16.msrb.mxu0 %v3976_v49  ;;  %1651 = vmatpush.bf16.msrb.mxu1 %v3977_v44 }
 0x2a3   :  { %1664 = vmatpush.bf16.msrb.mxu2 %v3978_v4 }
 0x2a6   :  { %1639 = vmatpush.bf16.msrb.mxu0 %v3979_v17  ;;  %1652 = vmatpush.bf16.msrb.mxu1 %v3980_v50 }
 0x2a7   :  { %1665 = vmatpush.bf16.msrb.mxu2 %v3981_v3 }
 0x2aa   :  { %1640 = vmatpush.bf16.msrb.mxu0 %v3982_v18  ;;  %1653 = vmatpush.bf16.msrb.mxu1 %v3983_v42 }
 0x2ab   :  { %1666 = vmatpush.bf16.msrb.mxu2 %v3984_v5 }
 0x2c8   :  { %v1331_v58 = vpop.f32.mrf.mxu0  ;;  %v1344_v45 = vpop.f32.mrf.mxu1 }
 0x2c9   :  { %v1363_v52 = vrot.slane %v1331_v58, 5  ;;  %v1364_v49 = vrot.slane %v1344_v45, 5 }
 0x2cb   :  { %v1367_v44 = vadd.f32 %v1363_v52, %v3985_v41  ;;  %v1368_v4 = vadd.f32 %v1364_v49, %v3986_v11  ;;  %v3501_v52 = vld [vmem:[%s3634_s4] sm:$0x1] }
 0x2cc   :  { %3987 = vst [vmem:[#allocation74_spill] sm:$0xff] %v3501_v52 }
 0x2cd   :  { %v1369_v32 = vsub.f32 0.0, %v1367_v44  ;;  %v1370_v17 = vsub.f32 0.0, %v1368_v4 }
 0x2cf   :  { %v1371_v29 = vmul.f32 1.442695, %v1369_v32  ;;  %v1357_v50 = vpop.f32.mrf.mxu2  ;;  %v1409_v35 = vpop.f32.mrf.mxu3  ;;  %v1373_v3 = vmul.f32 1.442695, %v1370_v17 }
 0x2d0   :  { %v1333_v26 = vpop.f32.mrf.mxu0  ;;  %v1346_v18 = vpop.f32.mrf.mxu1  ;;  %v1379_v32 = vadd.f32 %v3501_v52, %v1357_v50  ;;  %v1410_v17 = vadd.f32 %v1409_v35, %v3931_v25 }
 0x2d1   :  { %2622 = vpow2.f32 %v1371_v29 }
 0x2d2   :  { %2624 = vpow2.f32 %v1373_v3  ;;  %v1381_v3 = vrot.slane %v1379_v32, 5 }
 0x2d7   :  { %v2623_v42 = vpop.eup %2622  ;;  %v1359_v5 = vpop.f32.mrf.mxu2 }
 0x2d8   :  { %v1411_v2 = vpop.f32.mrf.mxu3  ;;  %v1375_v27 = vadd.f32 1.0, %v2623_v42  ;;  %v1435_v58 = vpop.f32.mrf.mxu1 }
 0x2d9   :  { %v2625_v45 = vpop.eup %2624 }
 0x2da   :  { %2626 = vrcp.f32 %v1375_v27  ;;  %v1376_v26 = vadd.f32 1.0, %v2625_v45  ;;  %v3988_v27 = vld [vmem:[#allocation87_spill] sm:$0xff] }
 0x2db   :  { %v1436_v4 = vadd.f32 %v1435_v58, %v3988_v27 }
 0x2dc   :  { %2628 = vrcp.f32 %v1376_v26  ;;  %v1389_v26 = vrot.slane %v3398_v10, 7 }
 0x2de   :  { %v1422_v18 = vpop.f32.mrf.mxu0 }
 0x2df   :  { %v1423_v29 = vadd.f32 %v1422_v18, %v1410_v17 }
 0x2e0   :  { %v1461_v49 = vpop.f32.mrf.mxu3  ;;  %v2627_v5 = vpop.eup %2626 }
 0x2e1   :  { %v1504_v2 = vsub.f32 0.0, %v1423_v29  ;;  %v1437_v42 = vpop.f32.mrf.mxu1  ;;  %v1383_v44 = vmul.f32 %v2627_v5, %v1381_v3 }
 0x2e2   :  { %v2629_v25 = vpop.eup %2628 }
 0x2e3   :  { %v1506_v41 = vmul.f32 1.442695, %v1504_v2  ;;  %v1384_v11 = vadd.f32 %v1383_v44, %v3933_v21  ;;  %v1386_v29 = vsub.f32 1.0, %v2629_v25  ;;  %v1391_v2 = vmul.f32 %v2629_v25, %v1389_v26 }
 0x2e4   :  { %v1448_v14 = vpop.f32.mrf.mxu2 }
 0x2e5   :  { %2630 = vpow2.f32 %v1506_v41  ;;  %v1449_v50 = vadd.f32 %v1448_v14, %v1436_v4 }
 0x2e6   :  { %2632 = vtanh.f32 %v1384_v11  ;;  %v1424_v35 = vpop.f32.mrf.mxu0 }
 0x2e7   :  { %v1505_v45 = vsub.f32 0.0, %v1449_v50 }
 0x2e8   :  { %v1463_v17 = vpop.f32.mrf.mxu3 }
 0x2e9   :  { %v1508_v32 = vmul.f32 1.442695, %v1505_v45 }
 0x2ea   :  { %v1487_v18 = vpop.f32.mrf.mxu1 }
 0x2eb   :  { %v2631_v52 = vpop.eup %2630  ;;  %2634 = vpow2.f32 %v1508_v32  ;;  %v1488_v45 = vadd.f32 %v1487_v18, %v3934_v51 }
 0x2ec   :  { %v2633_v3 = vpop.eup %2632  ;;  %v1510_v58 = vadd.f32 1.0, %v2631_v52  ;;  %v1450_v5 = vpop.f32.mrf.mxu2  ;;  %v1462_v52 = vadd.f32 %v1461_v49, %v3291_v48 }
 0x2ed   :  { %v1387_v42 = vmul.f32 %v2633_v3, %v1386_v29 }
 0x2ee   :  { %v1474_v44 = vpop.f32.mrf.mxu0  ;;  %2636 = vrcp.f32 %v1510_v58 }
 0x2ef   :  { %v3508_v41 = vadd.f32 %v1391_v2, %v1387_v42  ;;  %v1475_v26 = vadd.f32 %v1474_v44, %v1462_v52  ;;  %v4006_v52 = vld [vmem:[#allocation61_spill] sm:$0xff] }
 0x2f1   :  { %v2635_v14 = vpop.eup %2634  ;;  %v1521_v11 = vpack.c.bf16 %v3508_v41, %v3508_v41 }
 0x2f2   :  { %v1489_v4 = vpop.f32.mrf.mxu1  ;;  %v1511_v35 = vadd.f32 1.0, %v2635_v14 }
 0x2f3   :  { %v1523_v50 = vshrl.u32 %v1521_v11, 16  ;;  %v3999_v11 = vld [vmem:[#allocation62_spill] sm:$0xff]  ;;  %v4000_v4 = vld [vmem:[#allocation52_spill] sm:$0xff] }
 0x2f4   :  { %v1500_v10 = vpop.f32.mrf.mxu2  ;;  %v2637_v25 = vpop.eup %2636  ;;  %2638 = vrcp.f32 %v1511_v35  ;;  %v4002_v35 = vld [vmem:[#allocation57_spill] sm:$0xff] }
 0x2f5   :  { %v1525_v17 = vrot.slane %v1523_v50, 1  ;;  %v1501_v32 = vadd.f32 %v1500_v10, %v1488_v45  ;;  %v4001_v50 = vld [vmem:[#allocation51_spill] sm:$0xff]  ;;  %v4004_v10 = vld [vmem:[#allocation56_spill] sm:$0xff] }
 0x2f6   :  { %v1476_v29 = vpop.f32.mrf.mxu0  ;;  %v4003_v45 = vld [vmem:[#allocation67_spill] sm:$0xff] }
 0x2f7   :  { %v1514_v3 = vmul.f32 %v2637_v25, %v1501_v32  ;;  %1535 = vmatmul.bf16.vlgmr.msrb.gmra.mxu3 %v1525_v17  ;;  %1548 = vmatmul.bf16.vlgmr.msra.gmra.mxu0 %v1525_v17  ;;  %v4007_v32 = vld [vmem:[#allocation70_spill] sm:$0xff]  ;;  %v4008_v25 = vld [vmem:[#allocation60_spill] sm:$0xff]  ;;  %v4009_v29 = vld [vmem:[#allocation59_spill] sm:$0xff] }
 0x2f8   :  { %1561 = vmatmul.bf16.vlgmr.msra.gmra.mxu1 %v1525_v17  ;;  %1615 = vmatmul.bf16.vlgmr.msra.gmra.mxu2 %v1525_v17 }
 0x2f9   :  { %v1515_v58 = vadd.f32 %v1514_v3, %v1475_v26  ;;  %1685 = vmatpush.bf16.msra.mxu0 %v3879_v28  ;;  %1672 = vmatpush.bf16.msrb.mxu3 %v3133_v34  ;;  %v4010_v26 = vld [vmem:[#allocation66_spill] sm:$0xff]  ;;  %v4011_v3 = vld [vmem:[#allocation71_spill] sm:$0xff] }
 0x2fa   :  { %1698 = vmatpush.bf16.msra.mxu1 %v3880_v7  ;;  %1739 = vmatpush.bf16.msra.mxu2 %v2978_v33  ;;  %v2639_v18 = vpop.eup %2638 }
 0x2fb   :  { %2640 = vtanh.f32 %v1515_v58  ;;  %v1517_v5 = vsub.f32 1.0, %v2639_v18  ;;  %v1519_v42 = vmul.f32 %v2639_v18, %v3417_v53  ;;  %v4012_v58 = vld [vmem:[#allocation65_spill] sm:$0xff]  ;;  %v4014_v18 = vld [vmem:[#allocation68_spill] sm:$0xff] }
 0x2fc   :  { %v1502_v49 = vpop.f32.mrf.mxu2 }
 0x2fd   :  { %1686 = vmatpush.bf16.msra.mxu0 %v3882_v15  ;;  %1673 = vmatpush.bf16.msrb.mxu3 %v3145_v24  ;;  %v4013_v49 = vld [vmem:[#allocation63_spill] sm:$0xff] }
 0x2fe   :  { %1699 = vmatpush.bf16.msra.mxu1 %v3883_v43  ;;  %1740 = vmatpush.bf16.msra.mxu2 %v3935_v63 }
 0x301   :  { %v2641_v2 = vpop.eup %2640  ;;  %1687 = vmatpush.bf16.msra.mxu0 %v3885_v9  ;;  %1674 = vmatpush.bf16.msrb.mxu3 %v3155_v22 }
 0x302   :  { %v1518_v33 = vmul.f32 %v2641_v2, %v1517_v5  ;;  %1700 = vmatpush.bf16.msra.mxu1 %v3886_v1  ;;  %1741 = vmatpush.bf16.msra.mxu2 %v3939_v47  ;;  %v4015_v5 = vld [vmem:[#allocation73_spill] sm:$0xff] }
 0x304   :  { %v3527_v44 = vadd.f32 %v1519_v42, %v1518_v33  ;;  %v4018_v42 = vld [vmem:[#allocation74_spill] sm:$0xff] }
 0x305   :  { %1688 = vmatpush.bf16.msra.mxu0 %v3889_v30  ;;  %1675 = vmatpush.bf16.msrb.mxu3 %v3888_v23 }
 0x306   :  { %1701 = vmatpush.bf16.msra.mxu1 %v3890_v6  ;;  %v1599_v63 = vrot.slane %v3527_v44, 5  ;;  %1742 = vmatpush.bf16.msra.mxu2 %v3943_v40  ;;  %v3989_v40 = vld [vmem:[#allocation38_spill] sm:$0xff] }
 0x307   :  { %1641 = vmatmul.bf16.vlgmr.msrb.gmra.mxu0 %v1525_v17 }
 0x308   :  { %1667 = vmatmul.bf16.vlgmr.msrb.gmra.mxu2 %v1525_v17  ;;  %v1601_v53 = vpack.c.bf16 %v1599_v63, %v1599_v63 }
 0x309   :  { %1689 = vmatpush.bf16.msra.mxu0 %v3892_v31  ;;  %1676 = vmatpush.bf16.msrb.mxu3 %v3175_v56 }
 0x30a   :  { %v1603_v47 = vshrl.u32 %v1601_v53, 16  ;;  %1702 = vmatpush.bf16.msra.mxu1 %v3893_v20  ;;  %1743 = vmatpush.bf16.msra.mxu2 %v3947_v13  ;;  %v3990_v13 = vld [vmem:[#allocation45_spill] sm:$0xff] }
 0x30c   :  { %v1605_v14 = vrot.slane %v1603_v47, 1 }
 0x30d   :  { %1690 = vmatpush.bf16.msra.mxu0 %v3189_v8  ;;  %1677 = vmatpush.bf16.msrb.mxu3 %v3187_v0 }
 0x30e   :  { %1628 = vmatmul.bf16.vlgmr.msra.gmra.mxu3 %v1605_v14  ;;  %1654 = vmatmul.bf16.vlgmr.msrb.gmra.mxu1 %v1605_v14 }
 0x30f   :  { %1703 = vmatpush.bf16.msra.mxu1 %v3192_v37  ;;  %1744 = vmatpush.bf16.msra.mxu2 %v3951_v16  ;;  %v3991_v16 = vld [vmem:[#allocation54_spill] sm:$0xff] }
 0x311   :  { %1691 = vmatpush.bf16.msra.mxu0 %v3199_v46  ;;  %1678 = vmatpush.bf16.msrb.mxu3 %v3197_v55 }
 0x313   :  { %1704 = vmatpush.bf16.msra.mxu1 %v3202_v62  ;;  %1745 = vmatpush.bf16.msra.mxu2 %v3955_v60  ;;  %v3993_v60 = vld [vmem:[#allocation43_spill] sm:$0xff] }
 0x315   :  { %1692 = vmatpush.bf16.msra.mxu0 %v3209_v54  ;;  %1679 = vmatpush.bf16.msrb.mxu3 %v3207_v19 }
 0x317   :  { %1705 = vmatpush.bf16.msra.mxu1 %v3212_v59  ;;  %1746 = vmatpush.bf16.msra.mxu2 %v3961_v61  ;;  %v3995_v61 = vld [vmem:[#allocation58_spill] sm:$0xff] }
 0x318   :  { %1693 = vmatmul.bf16.vlgmr.msra.gmra.mxu0 %v1525_v17  ;;  %v4005_v17 = vld [vmem:[#allocation55_spill] sm:$0xff] }
 0x319   :  { %1765 = vmatpush.bf16.msrb.mxu0 %v3958_v38  ;;  %1752 = vmatpush.bf16.msra.mxu3 %v2997_v57  ;;  %v3992_v57 = vld [vmem:[#allocation44_spill] sm:$0xff]  ;;  %v3994_v38 = vld [vmem:[#allocation49_spill] sm:$0xff] }
 0x31b   :  { %1778 = vmatpush.bf16.msrb.mxu1 %v3960_v39  ;;  %1791 = vmatpush.bf16.msrb.mxu2 %v3962_v36  ;;  %v3996_v39 = vld [vmem:[#allocation48_spill] sm:$0xff]  ;;  %v3997_v36 = vld [vmem:[#allocation47_spill] sm:$0xff] }
 0x31d   :  { %1766 = vmatpush.bf16.msrb.mxu0 %v3964_v12  ;;  %1753 = vmatpush.bf16.msra.mxu3 %v3989_v40  ;;  %v3998_v12 = vld [vmem:[#allocation53_spill] sm:$0xff] }
 0x31e   :  { %1680 = vmatmul.bf16.vlgmr.msrb.gmra.mxu3 %v1605_v14  ;;  %1706 = vmatmul.bf16.vlgmr.msra.gmra.mxu1 %v1605_v14  ;;  %v4019_v14 = vld [vmem:[#allocation86_spill] sm:$0xff] }
 0x31f   :  { %1779 = vmatpush.bf16.msrb.mxu1 %v3990_v13  ;;  %1792 = vmatpush.bf16.msrb.mxu2 %v3991_v16 }
 0x321   :  { %1767 = vmatpush.bf16.msrb.mxu0 %v3992_v57  ;;  %1754 = vmatpush.bf16.msra.mxu3 %v3993_v60 }
 0x323   :  { %1780 = vmatpush.bf16.msrb.mxu1 %v3994_v38  ;;  %1793 = vmatpush.bf16.msrb.mxu2 %v3995_v61 }
 0x325   :  { %1768 = vmatpush.bf16.msrb.mxu0 %v3996_v39  ;;  %1755 = vmatpush.bf16.msra.mxu3 %v3997_v36 }
 0x327   :  { %1781 = vmatpush.bf16.msrb.mxu1 %v3998_v12  ;;  %1794 = vmatpush.bf16.msrb.mxu2 %v3999_v11 }
 0x329   :  { %1769 = vmatpush.bf16.msrb.mxu0 %v4000_v4  ;;  %1756 = vmatpush.bf16.msra.mxu3 %v4001_v50 }
 0x32b   :  { %1782 = vmatpush.bf16.msrb.mxu1 %v4002_v35  ;;  %1795 = vmatpush.bf16.msrb.mxu2 %v4003_v45 }
 0x32d   :  { %1770 = vmatpush.bf16.msrb.mxu0 %v4004_v10  ;;  %1757 = vmatpush.bf16.msra.mxu3 %v4005_v17 }
 0x32f   :  { %1783 = vmatpush.bf16.msrb.mxu1 %v4006_v52  ;;  %1796 = vmatpush.bf16.msrb.mxu2 %v4007_v32  ;;  %v1594_v32 = vrot.slane %v3508_v41, 7 }
 0x331   :  { %1771 = vmatpush.bf16.msrb.mxu0 %v4008_v25  ;;  %1758 = vmatpush.bf16.msra.mxu3 %v4009_v29 }
 0x333   :  { %1784 = vmatpush.bf16.msrb.mxu1 %v4010_v26  ;;  %1797 = vmatpush.bf16.msrb.mxu2 %v4011_v3 }
 0x335   :  { %1772 = vmatpush.bf16.msrb.mxu0 %v4012_v58  ;;  %1759 = vmatpush.bf16.msra.mxu3 %v4013_v49 }
 0x337   :  { %1785 = vmatpush.bf16.msrb.mxu1 %v4014_v18  ;;  %1798 = vmatpush.bf16.msrb.mxu2 %v4015_v5 }
 0x339   :  { %1817 = vmatpush.bf16.msra.mxu0 %v3879_v28  ;;  %1804 = vmatpush.bf16.msrb.mxu3 %v3133_v34 }
 0x33b   :  { %1830 = vmatpush.bf16.msra.mxu1 %v3880_v7 }
 0x33d   :  { %1818 = vmatpush.bf16.msra.mxu0 %v3882_v15  ;;  %1805 = vmatpush.bf16.msrb.mxu3 %v3145_v24 }
 0x33f   :  { %1831 = vmatpush.bf16.msra.mxu1 %v3883_v43 }
 0x341   :  { %1819 = vmatpush.bf16.msra.mxu0 %v3885_v9  ;;  %1806 = vmatpush.bf16.msrb.mxu3 %v3155_v22 }
 0x343   :  { %1832 = vmatpush.bf16.msra.mxu1 %v3886_v1 }
 0x345   :  { %1820 = vmatpush.bf16.msra.mxu0 %v3889_v30  ;;  %1807 = vmatpush.bf16.msrb.mxu3 %v3888_v23 }
 0x347   :  { %1833 = vmatpush.bf16.msra.mxu1 %v3890_v6 }
 0x349   :  { %1821 = vmatpush.bf16.msra.mxu0 %v3892_v31  ;;  %1808 = vmatpush.bf16.msrb.mxu3 %v3175_v56  ;;  %v4016_v56 = vld [vmem:[#allocation64_spill] sm:$0xff] }
 0x34b   :  { %1834 = vmatpush.bf16.msra.mxu1 %v3893_v20 }
 0x34d   :  { %1822 = vmatpush.bf16.msra.mxu0 %v3189_v8  ;;  %1809 = vmatpush.bf16.msrb.mxu3 %v3187_v0 }
 0x34f   :  { %1835 = vmatpush.bf16.msra.mxu1 %v3192_v37 }
 0x351   :  { %1823 = vmatpush.bf16.msra.mxu0 %v3199_v46  ;;  %1810 = vmatpush.bf16.msrb.mxu3 %v3197_v55  ;;  %v4017_v46 = vld [vmem:[#allocation41_spill] sm:$0xff] }
 0x353   :  { %1836 = vmatpush.bf16.msra.mxu1 %v3202_v62 }
 0x355   :  { %1824 = vmatpush.bf16.msra.mxu0 %v3209_v54  ;;  %1811 = vmatpush.bf16.msrb.mxu3 %v3207_v19 }
 0x357   :  { %1837 = vmatpush.bf16.msra.mxu1 %v3212_v59 }
 0x374   :  { %v1549_v34 = vpop.f32.mrf.mxu0 }
 0x375   :  { %v1562_v24 = vpop.f32.mrf.mxu1  ;;  %v1569_v22 = vrot.slane %v1549_v34, 4 }
 0x376   :  { %v1584_v33 = vadd.f32 %v4018_v42, %v1562_v24 }
 0x377   :  { %v1573_v8 = vadd.f32 %v1569_v22, %v4016_v56 }
 0x378   :  { %v1586_v13 = vrot.slane %v1584_v33, 4 }
 0x379   :  { %v1575_v43 = vsub.f32 0.0, %v1573_v8 }
 0x37a   :  { %v1536_v0 = vpop.f32.mrf.mxu3 }
 0x37b   :  { %v1568_v28 = vrot.slane %v1536_v0, 4  ;;  %v1616_v37 = vpop.f32.mrf.mxu2  ;;  %v1578_v54 = vmul.f32 1.442695, %v1575_v43 }
 0x37c   :  { %v1551_v7 = vpop.f32.mrf.mxu0  ;;  %v1617_v40 = vadd.f32 %v1616_v37, %v4019_v14 }
 0x37d   :  { %v1572_v15 = vadd.f32 %v1568_v28, %v4017_v46  ;;  %v1564_v55 = vpop.f32.mrf.mxu1 }
 0x37f   :  { %v1574_v62 = vsub.f32 0.0, %v1572_v15 }
 0x381   :  { %v1576_v9 = vmul.f32 1.442695, %v1574_v62 }
 0x382   :  { %v1538_v1 = vpop.f32.mrf.mxu3 }
 0x383   :  { %2642 = vpow2.f32 %v1576_v9  ;;  %v1618_v19 = vpop.f32.mrf.mxu2 }
 0x384   :  { %v1642_v59 = vpop.f32.mrf.mxu0  ;;  %2644 = vpow2.f32 %v1578_v54 }
 0x385   :  { %v1643_v63 = vadd.f32 %v1642_v59, %v3988_v27 }
 0x389   :  { %v2643_v23 = vpop.eup %2642 }
 0x38a   :  { %v1580_v30 = vadd.f32 1.0, %v2643_v23  ;;  %v2645_v20 = vpop.eup %2644 }
 0x38b   :  { %v1655_v6 = vpop.f32.mrf.mxu1  ;;  %v1668_v31 = vpop.f32.mrf.mxu2  ;;  %v1581_v53 = vadd.f32 1.0, %v2645_v20 }
 0x38c   :  { %2646 = vrcp.f32 %v1580_v30  ;;  %v1644_v2 = vpop.f32.mrf.mxu0  ;;  %v1656_v47 = vadd.f32 %v1655_v6, %v1643_v63  ;;  %v1669_v0 = vadd.f32 %v1668_v31, %v3291_v48  ;;  %v2558_v6 = vld [vmem:[#allocation8 + $0x38] sm:$0xff]  ;;  %v2555_v63 = vld [vmem:[#allocation8 + $0x20] sm:$0xff] }
 0x38d   :  { %2648 = vrcp.f32 %v1581_v53  ;;  %v2557_v2 = vld [vmem:[#allocation8 + $0x30] sm:$0xff]  ;;  %v2554_v53 = vld [vmem:[#allocation8 + $0x18] sm:$0xff] }
 0x38e   :  { %v1712_v61 = vsub.f32 0.0, %v1656_v47 }
 0x390   :  { %v1715_v35 = vmul.f32 1.442695, %v1712_v61 }
 0x391   :  { %v1629_v16 = vpop.f32.mrf.mxu3 }
 0x392   :  { %v2647_v57 = vpop.eup %2646  ;;  %v1630_v60 = vadd.f32 %v1629_v16, %v1617_v40 }
 0x393   :  { %v1588_v38 = vmul.f32 %v2647_v57, %v1586_v13  ;;  %v1657_v39 = vpop.f32.mrf.mxu1  ;;  %v1670_v36 = vpop.f32.mrf.mxu2  ;;  %v2553_v57 = vld [vmem:[#allocation8 + $0x10] sm:$0xff] }
 0x394   :  { %v1711_v12 = vsub.f32 0.0, %v1630_v60  ;;  %v2649_v45 = vpop.eup %2648  ;;  %v2552_v39 = vld [vmem:[#allocation8 + $0x8] sm:$0xff] }
 0x395   :  { %v1589_v11 = vadd.f32 %v1588_v38, %v3933_v21  ;;  %v1694_v4 = vpop.f32.mrf.mxu0  ;;  %v1591_v52 = vsub.f32 1.0, %v2649_v45  ;;  %v1596_v3 = vmul.f32 %v2649_v45, %v1594_v32 }
 0x396   :  { %v1713_v50 = vmul.f32 1.442695, %v1711_v12  ;;  %v1695_v56 = vadd.f32 %v1694_v4, %v3934_v51 }
 0x397   :  { %2650 = vtanh.f32 %v1589_v11 }
 0x398   :  { %2652 = vpow2.f32 %v1713_v50 }
 0x399   :  { %v1631_v10 = vpop.f32.mrf.mxu3  ;;  %2654 = vpow2.f32 %v1715_v35  ;;  %v2551_v35 = vld [vmem:[#allocation8] sm:$0xff] }
 0x39b   :  { %v1707_v17 = vpop.f32.mrf.mxu1 }
 0x39c   :  { %v1708_v28 = vadd.f32 %v1707_v17, %v1695_v56 }
 0x39d   :  { %v2651_v25 = vpop.eup %2650  ;;  %v1696_v29 = vpop.f32.mrf.mxu0 }
 0x39e   :  { %v2653_v26 = vpop.eup %2652  ;;  %v1592_v58 = vmul.f32 %v2651_v25, %v1591_v52 }
 0x39f   :  { %v1717_v49 = vadd.f32 1.0, %v2653_v26  ;;  %v2655_v21 = vpop.eup %2654 }
 0x3a0   :  { %v1597_v18 = vadd.f32 %v1596_v3, %v1592_v58  ;;  %v1718_v22 = vadd.f32 1.0, %v2655_v21 }
 0x3a1   :  { %2656 = vrcp.f32 %v1717_v49  ;;  %v1681_v5 = vpop.f32.mrf.mxu3 }
 0x3a2   :  { %v1731_v34 = vpack.c.bf16 %v1597_v18, %v1597_v18  ;;  %2658 = vrcp.f32 %v1718_v22  ;;  %v1682_v7 = vadd.f32 %v1681_v5, %v1669_v0 }
 0x3a3   :  { %v1709_v24 = vpop.f32.mrf.mxu1 }
 0x3a4   :  { %v1735_v8 = vrot.slane %v1731_v34, 2 }
 0x3a6   :  { %1747 = vmatmul.bf16.vlgmr.msra.gmra.mxu2 %v1735_v8  ;;  %1773 = vmatmul.bf16.vlgmr.msrb.gmra.mxu0 %v1735_v8 }
 0x3a7   :  { %v2657_v41 = vpop.eup %2656  ;;  %1926 = vmatpush.bf16.msra.mxu2 %v2558_v6 }
 0x3a8   :  { %v1721_v37 = vmul.f32 %v2657_v41, %v1708_v28  ;;  %v2659_v55 = vpop.eup %2658 }
 0x3a9   :  { %v1683_v46 = vpop.f32.mrf.mxu3  ;;  %v1724_v43 = vsub.f32 1.0, %v2659_v55  ;;  %v1726_v9 = vmul.f32 %v2659_v55, %v3527_v44  ;;  %v2556_v44 = vld [vmem:[#allocation8 + $0x28] sm:$0xff] }
 0x3aa   :  { %v1722_v15 = vadd.f32 %v1721_v37, %v1682_v7 }
 0x3ab   :  { %1927 = vmatpush.bf16.msra.mxu2 %v2557_v2 }
 0x3ac   :  { %2660 = vtanh.f32 %v1722_v15 }
 0x3af   :  { %1928 = vmatpush.bf16.msra.mxu2 %v2556_v44 }
 0x3b2   :  { %v2661_v62 = vpop.eup %2660 }
 0x3b3   :  { %v1725_v54 = vmul.f32 %v2661_v62, %v1724_v43  ;;  %1929 = vmatpush.bf16.msra.mxu2 %v2555_v63 }
 0x3b5   :  { %v3616_v1 = vadd.f32 %v1726_v9, %v1725_v54 }
 0x3b6   :  { %1799 = vmatmul.bf16.vlgmr.msrb.gmra.mxu2 %v1735_v8  ;;  %1825 = vmatmul.bf16.vlgmr.msra.gmra.mxu0 %v1735_v8 }
 0x3b7   :  { %v1729_v19 = vrot.slane %v3616_v1, 4  ;;  %1930 = vmatpush.bf16.msra.mxu2 %v2554_v53 }
 0x3b9   :  { %v1732_v59 = vpack.c.bf16 %v1729_v19, %v1729_v19 }
 0x3bb   :  { %v1736_v23 = vrot.slane %v1732_v59, 2  ;;  %1931 = vmatpush.bf16.msra.mxu2 %v2553_v57 }
 0x3bd   :  { %1760 = vmatmul.bf16.vlgmr.msra.gmra.mxu3 %v1736_v23  ;;  %1786 = vmatmul.bf16.vlgmr.msrb.gmra.mxu1 %v1736_v23 }
 0x3bf   :  { %1932 = vmatpush.bf16.msra.mxu2 %v2552_v39 }
 0x3c3   :  { %1933 = vmatpush.bf16.msra.mxu2 %v2551_v35 }
 0x3cd   :  { %1812 = vmatmul.bf16.vlgmr.msrb.gmra.mxu3 %v1736_v23  ;;  %1838 = vmatmul.bf16.vlgmr.msra.gmra.mxu1 %v1736_v23 }
 0x423   :  { %v1774_v30 = vpop.f32.mrf.mxu0 }
 0x424   :  { %v1775_v16 = vadd.f32 %v1774_v30, %v3988_v27 }
 0x429   :  { %v1748_v31 = vpop.f32.mrf.mxu2 }
 0x42a   :  { %v1749_v38 = vadd.f32 %v1748_v31, %v4019_v14 }
 0x42b   :  { %v1776_v20 = vpop.f32.mrf.mxu0 }
 0x431   :  { %v1750_v42 = vpop.f32.mrf.mxu2 }
 0x433   :  { %v1826_v33 = vpop.f32.mrf.mxu0 }
 0x434   :  { %v1827_v26 = vadd.f32 %v1826_v33, %v3934_v51 }
 0x439   :  { %v1800_v47 = vpop.f32.mrf.mxu2 }
 0x43a   :  { %v1787_v40 = vpop.f32.mrf.mxu1  ;;  %v1801_v58 = vadd.f32 %v1800_v47, %v3291_v48  ;;  %v1877_v48 = vld [vmem:[%s3638_s8] sm:$0x1] }
 0x43b   :  { %v1828_v13 = vpop.f32.mrf.mxu0  ;;  %v1788_v60 = vadd.f32 %v1787_v40, %v1775_v16 }
 0x43d   :  { %v1844_v11 = vsub.f32 0.0, %v1788_v60 }
 0x43f   :  { %v1847_v10 = vmul.f32 1.442695, %v1844_v11 }
 0x440   :  { %v1761_v61 = vpop.f32.mrf.mxu3 }
 0x441   :  { %v1762_v36 = vadd.f32 %v1761_v61, %v1749_v38  ;;  %v1802_v12 = vpop.f32.mrf.mxu2 }
 0x442   :  { %v1789_v4 = vpop.f32.mrf.mxu1 }
 0x443   :  { %v1843_v50 = vsub.f32 0.0, %v1762_v36 }
 0x445   :  { %v1845_v45 = vmul.f32 1.442695, %v1843_v50 }
 0x447   :  { %2662 = vpow2.f32 %v1845_v45 }
 0x448   :  { %v1763_v17 = vpop.f32.mrf.mxu3  ;;  %2664 = vpow2.f32 %v1847_v10 }
 0x44a   :  { %v1839_v27 = vpop.f32.mrf.mxu1 }
 0x44b   :  { %v1840_v49 = vadd.f32 %v1839_v27, %v1827_v26 }
 0x44d   :  { %v2663_v52 = vpop.eup %2662 }
 0x44e   :  { %v1849_v32 = vadd.f32 1.0, %v2663_v52  ;;  %v2665_v25 = vpop.eup %2664 }
 0x44f   :  { %v1850_v3 = vadd.f32 1.0, %v2665_v25 }
 0x450   :  { %2666 = vrcp.f32 %v1849_v32  ;;  %v1813_v14 = vpop.f32.mrf.mxu3 }
 0x451   :  { %2668 = vrcp.f32 %v1850_v3  ;;  %v1814_v5 = vadd.f32 %v1813_v14, %v1801_v58 }
 0x452   :  { %v1841_v29 = vpop.f32.mrf.mxu1 }
 0x456   :  { %v2667_v18 = vpop.eup %2666 }
 0x457   :  { %v1853_v21 = vmul.f32 %v2667_v18, %v1840_v49  ;;  %v2669_v22 = vpop.eup %2668 }
 0x458   :  { %v1815_v34 = vpop.f32.mrf.mxu3  ;;  %v1856_v56 = vsub.f32 1.0, %v2669_v22  ;;  %v1858_v0 = vmul.f32 %v2669_v22, %v3616_v1 }
 0x459   :  { %v1854_v24 = vadd.f32 %v1853_v21, %v1814_v5 }
 0x45b   :  { %2670 = vtanh.f32 %v1854_v24 }
 0x461   :  { %v2671_v8 = vpop.eup %2670 }
 0x462   :  { %v1857_v28 = vmul.f32 %v2671_v8, %v1856_v56 }
 0x464   :  { %v1859_v41 = vadd.f32 %v1858_v0, %v1857_v28 }
 0x466   :  { %v1860_v37 = vpack.c.bf16 %v1859_v41, %v1859_v41 }
 0x468   :  { %1934 = vmatmul.bf16.vlgmr.msra.gmra.mxu2 %v1860_v37 }
 0x4eb   :  { %v1935_v51 = vpop.f32.mrf.mxu2 }
 0x4ec   :  { %v1936_v7 = vadd.f32 %v1935_v51, %v1877_v48 }
 0x4ee   :  { %1939 = vst [vmem:[#allocation10] sm:$0x1] %v1936_v7 }
 0x4ef   :  { %1950 = dma.vmem_to_hbm [thread:$0]  %s1946_s19, 16, %s1948_s22, [#allocation4]  }
 0x4f3   :  { %v1937_v46 = vpop.f32.mrf.mxu2 }
 0x4f4   :  { %2799 = dma.done.wait [#allocation4], 16  }
 0x4f5   :  { %2800 = vsyncadd [#allocation4], 4294967280 }
 0x4f6   :  { %1955 = vsyncpa [#allocation3], 1 }
 0x4f7   :  { %1956 = vsyncpa [#allocation6], 1 }
 0x4f8   :  { %1957 = vsyncpa [#allocation9], 1 }
 0x4f9   :  { %1958 = vsyncpa [#allocation4], 1 }

</bundles_post_ra>
